<compile_context>
chip_gen: v7x
topology: tpu7x:2x2x1
jax: 0.10.0
libtpu: 0.0.40
codegen_flags: <defaults>
</compile_context>

<pallas_src>
import jax
import jax.numpy as jnp
from jax.experimental import pallas as pl
from jax.experimental.pallas import tpu as pltpu

KSIZE = 7
PAD = (KSIZE - 1) // 2  # 3


def _spatial_gate_kernel(w_ref, x_ref, out_ref, pad_ref):
    """One batch element per grid step.

    w_ref   : SMEM (2*7*7 + 1,) f32   folded conv weights + folded BN bias
    x_ref   : VMEM (1, C, H, W)       unpadded input block
    out_ref : VMEM (1, C, H, W)
    pad_ref : VMEM (2, H+6, W+6) f32  zero-padded pooled maps (scratch)
    """
    C, H, W = x_ref.shape[1], x_ref.shape[2], x_ref.shape[3]

    # ---- ChannelPool: vectorized max / mean over the channel axis ----
    xf = x_ref[0].astype(jnp.float32)            # (C, H, W)
    mx = jnp.max(xf, axis=0)                     # (H, W)
    mean = jnp.sum(xf, axis=0) * (1.0 / C)       # (H, W)

    # Zero-padded pooled maps in a tiny scratch; the zero border reproduces
    # the conv's zero padding of the pooled tensor exactly.
    pad_ref[...] = jnp.zeros_like(pad_ref)
    pad_ref[0, PAD:PAD + H, PAD:PAD + W] = mx    # channel 0 = max (cat order)
    pad_ref[1, PAD:PAD + H, PAD:PAD + W] = mean  # channel 1 = mean

    # ---- 7x7 conv (2 -> 1 channel), BN folded in.  All weights hoisted;
    # one (H, W+6) slab load per (cin, dy), 7 static lane slices per slab. ----
    w = [w_ref[i] for i in range(2 * KSIZE * KSIZE)]
    bias = w_ref[2 * KSIZE * KSIZE]

    acc = jnp.zeros((H, W), jnp.float32)
    for cin in range(2):
        for dy in range(KSIZE):
            slab = pad_ref[cin, dy:dy + H, :]    # (H, W + 6)
            for dx in range(KSIZE):
                wv = w[cin * KSIZE * KSIZE + dy * KSIZE + dx]
                acc = acc + wv * slab[:, dx:dx + W]
    scale = jax.nn.sigmoid(acc + bias)           # (H, W), f32

    # ---- gate: one dense broadcast multiply + one full-block store ----
    xg = x_ref[0]                                # (C, H, W), native dtype
    out_ref[0] = (xg * scale.astype(xg.dtype)[None]).astype(out_ref.dtype)


@jax.jit
def spatial_gate(x, conv_w, bn_gamma, bn_beta, bn_mean, bn_var, eps=1e-5):
    """x: (B, C, H, W). conv_w: (1, 2, 7, 7) OIHW, no bias."""
    B, C, H, W = x.shape

    # Fold inference-mode BatchNorm into the conv weight / bias.
    inv = bn_gamma / jnp.sqrt(bn_var + eps)                    # (1,)
    w_eff = (conv_w * inv[:, None, None, None]).reshape(-1)    # (98,)
    b_eff = (bn_beta - bn_mean * inv).reshape(-1)              # (1,)
    params = jnp.concatenate([w_eff, b_eff]).astype(jnp.float32)  # (99,)

    return pl.pallas_call(
        _spatial_gate_kernel,
        out_shape=jax.ShapeDtypeStruct((B, C, H, W), x.dtype),
        grid=(B,),
        in_specs=[
            pl.BlockSpec(memory_space=pltpu.MemorySpace.SMEM),
            pl.BlockSpec((1, C, H, W), lambda b: (b, 0, 0, 0)),
        ],
        out_specs=pl.BlockSpec((1, C, H, W), lambda b: (b, 0, 0, 0)),
        scratch_shapes=[
            pltpu.VMEM((2, H + 2 * PAD, W + 2 * PAD), jnp.float32),
        ],
        compiler_params=pltpu.CompilerParams(
            dimension_semantics=("parallel",),
            vmem_limit_bytes=64 * 1024 * 1024),
    )(params, x)


def _reference(x, conv_w, bn_gamma, bn_beta, bn_mean, bn_var, eps=1e-5):
    mx = jnp.max(x, axis=1, keepdims=True)
    mn = jnp.mean(x, axis=1, keepdims=True)
    pooled = jnp.concatenate([mx, mn], axis=1)
    conv = jax.lax.conv_general_dilated(
        pooled, conv_w, window_strides=(1, 1),
        padding=((PAD, PAD), (PAD, PAD)),
        dimension_numbers=("NCHW", "OIHW", "NCHW"))
    g = bn_gamma.reshape(1, -1, 1, 1)
    b = bn_beta.reshape(1, -1, 1, 1)
    m = bn_mean.reshape(1, -1, 1, 1)
    v = bn_var.reshape(1, -1, 1, 1)
    bn = g * (conv - m) / jnp.sqrt(v + eps) + b
    return x * jax.nn.sigmoid(bn)


if __name__ == "__main__":
    key = jax.random.PRNGKey(0)
    kx, kw = jax.random.split(key)

    B, C, H, W = 2, 4, 16, 16
    x = jax.random.normal(kx, (B, C, H, W), dtype=jnp.float32)

    # Conv2d(2, 1, 7, bias=False) weight, PyTorch-style uniform init.
    fan_in = 2 * KSIZE * KSIZE
    bound = 1.0 / (fan_in ** 0.5)
    conv_w = jax.random.uniform(kw, (1, 2, KSIZE, KSIZE),
                                dtype=jnp.float32, minval=-bound, maxval=bound)

    # BatchNorm2d(1) parameters at PyTorch init.
    bn_gamma = jnp.ones((1,), jnp.float32)
    bn_beta = jnp.zeros((1,), jnp.float32)
    bn_mean = jnp.zeros((1,), jnp.float32)
    bn_var = jnp.ones((1,), jnp.float32)

    out = spatial_gate(x, conv_w, bn_gamma, bn_beta, bn_mean, bn_var)
    out = jax.block_until_ready(out)

    ref = _reference(x, conv_w, bn_gamma, bn_beta, bn_mean, bn_var)
    assert out.shape == (B, C, H, W)
    assert jnp.allclose(out, ref, atol=1e-5, rtol=1e-5), "mismatch vs reference"

    print("KERNEL_OK")
</pallas_src>

<mosaic_0001>
module attributes {stable_mosaic.version = 11 : i64} {
  func.func @_spatial_gate_kernel(%arg0: i32, %arg1: memref<99xf32, #tpu.memory_space<smem>>, %arg2: memref<1x4x16x16xf32, #tpu.memory_space<vmem>>, %arg3: memref<1x4x16x16xf32, #tpu.memory_space<vmem>>, %arg4: memref<2x22x22xf32, #tpu.memory_space<vmem>>) attributes {dimension_semantics = [#tpu.dimension_semantics<parallel>], iteration_bounds = array<i64: 2>, scalar_prefetch = 0 : i64, scratch_operands = 1 : i64, tpu.core_type = #tpu.core_type<tc>, window_params = [{transform_indices = @transform_0, window_bounds = array<i64: 99>}, {transform_indices = @transform_1, window_bounds = array<i64: 1, 4, 16, 16>}, {transform_indices = @transform_2, window_bounds = array<i64: 1, 4, 16, 16>}]} {
    %c0 = arith.constant 0 : index
    %c0_0 = arith.constant 0 : index
    %c0_1 = arith.constant 0 : index
    %c0_2 = arith.constant 0 : index
    %0 = vector.load %arg2[%c0, %c0_0, %c0_1, %c0_2] : memref<1x4x16x16xf32, #tpu.memory_space<vmem>>, vector<1x4x16x16xf32>
    %1 = vector.shape_cast %0 : vector<1x4x16x16xf32> to vector<4x16x16xf32>
    %cst = arith.constant dense<0xFF800000> : vector<16x16xf32>
    %2 = vector.multi_reduction <maximumf>, %1, %cst [0] : vector<4x16x16xf32> to vector<16x16xf32>
    %cst_3 = arith.constant dense<0.000000e+00> : vector<16x16xf32>
    %3 = vector.multi_reduction <add>, %1, %cst_3 [0] : vector<4x16x16xf32> to vector<16x16xf32>
    %cst_4 = arith.constant 2.500000e-01 : f32
    %4 = vector.broadcast %cst_4 : f32 to vector<16x16xf32>
    %5 = arith.mulf %3, %4 : vector<16x16xf32>
    %cst_5 = arith.constant 0.000000e+00 : f32
    %6 = vector.broadcast %cst_5 : f32 to vector<2x22x22xf32>
    %c0_6 = arith.constant 0 : index
    %c0_7 = arith.constant 0 : index
    %c0_8 = arith.constant 0 : index
    %7 = vector.load %arg4[%c0_6, %c0_7, %c0_8] : memref<2x22x22xf32, #tpu.memory_space<vmem>>, vector<2x22x22xf32>
    tpu.vector_store %arg4[%c0_6, %c0_7, %c0_8], %6 {strides = array<i32>} : memref<2x22x22xf32, #tpu.memory_space<vmem>>, vector<2x22x22xf32>,
    %c0_9 = arith.constant 0 : index
    %c3 = arith.constant 3 : index
    %c3_10 = arith.constant 3 : index
    %8 = vector.load %arg4[%c0_9, %c3, %c3_10] : memref<2x22x22xf32, #tpu.memory_space<vmem>>, vector<1x16x16xf32>
    %9 = vector.shape_cast %8 : vector<1x16x16xf32> to vector<16x16xf32>
    %10 = vector.shape_cast %2 : vector<16x16xf32> to vector<1x16x16xf32>
    tpu.vector_store %arg4[%c0_9, %c3, %c3_10], %10 {strides = array<i32>} : memref<2x22x22xf32, #tpu.memory_space<vmem>>, vector<1x16x16xf32>,
    %c1 = arith.constant 1 : index
    %c3_11 = arith.constant 3 : index
    %c3_12 = arith.constant 3 : index
    %11 = vector.load %arg4[%c1, %c3_11, %c3_12] : memref<2x22x22xf32, #tpu.memory_space<vmem>>, vector<1x16x16xf32>
    %12 = vector.shape_cast %11 : vector<1x16x16xf32> to vector<16x16xf32>
    %13 = vector.shape_cast %5 : vector<16x16xf32> to vector<1x16x16xf32>
    tpu.vector_store %arg4[%c1, %c3_11, %c3_12], %13 {strides = array<i32>} : memref<2x22x22xf32, #tpu.memory_space<vmem>>, vector<1x16x16xf32>,
    %c0_13 = arith.constant 0 : index
    %14 = memref.load %arg1[%c0_13] : memref<99xf32, #tpu.memory_space<smem>>
    %c1_14 = arith.constant 1 : index
    %15 = memref.load %arg1[%c1_14] : memref<99xf32, #tpu.memory_space<smem>>
    %c2 = arith.constant 2 : index
    %16 = memref.load %arg1[%c2] : memref<99xf32, #tpu.memory_space<smem>>
    %c3_15 = arith.constant 3 : index
    %17 = memref.load %arg1[%c3_15] : memref<99xf32, #tpu.memory_space<smem>>
    %c4 = arith.constant 4 : index
    %18 = memref.load %arg1[%c4] : memref<99xf32, #tpu.memory_space<smem>>
    %c5 = arith.constant 5 : index
    %19 = memref.load %arg1[%c5] : memref<99xf32, #tpu.memory_space<smem>>
    %c6 = arith.constant 6 : index
    %20 = memref.load %arg1[%c6] : memref<99xf32, #tpu.memory_space<smem>>
    %c7 = arith.constant 7 : index
    %21 = memref.load %arg1[%c7] : memref<99xf32, #tpu.memory_space<smem>>
    %c8 = arith.constant 8 : index
    %22 = memref.load %arg1[%c8] : memref<99xf32, #tpu.memory_space<smem>>
    %c9 = arith.constant 9 : index
    %23 = memref.load %arg1[%c9] : memref<99xf32, #tpu.memory_space<smem>>
    %c10 = arith.constant 10 : index
    %24 = memref.load %arg1[%c10] : memref<99xf32, #tpu.memory_space<smem>>
    %c11 = arith.constant 11 : index
    %25 = memref.load %arg1[%c11] : memref<99xf32, #tpu.memory_space<smem>>
    %c12 = arith.constant 12 : index
    %26 = memref.load %arg1[%c12] : memref<99xf32, #tpu.memory_space<smem>>
    %c13 = arith.constant 13 : index
    %27 = memref.load %arg1[%c13] : memref<99xf32, #tpu.memory_space<smem>>
    %c14 = arith.constant 14 : index
    %28 = memref.load %arg1[%c14] : memref<99xf32, #tpu.memory_space<smem>>
    %c15 = arith.constant 15 : index
    %29 = memref.load %arg1[%c15] : memref<99xf32, #tpu.memory_space<smem>>
    %c16 = arith.constant 16 : index
    %30 = memref.load %arg1[%c16] : memref<99xf32, #tpu.memory_space<smem>>
    %c17 = arith.constant 17 : index
    %31 = memref.load %arg1[%c17] : memref<99xf32, #tpu.memory_space<smem>>
    %c18 = arith.constant 18 : index
    %32 = memref.load %arg1[%c18] : memref<99xf32, #tpu.memory_space<smem>>
    %c19 = arith.constant 19 : index
    %33 = memref.load %arg1[%c19] : memref<99xf32, #tpu.memory_space<smem>>
    %c20 = arith.constant 20 : index
    %34 = memref.load %arg1[%c20] : memref<99xf32, #tpu.memory_space<smem>>
    %c21 = arith.constant 21 : index
    %35 = memref.load %arg1[%c21] : memref<99xf32, #tpu.memory_space<smem>>
    %c22 = arith.constant 22 : index
    %36 = memref.load %arg1[%c22] : memref<99xf32, #tpu.memory_space<smem>>
    %c23 = arith.constant 23 : index
    %37 = memref.load %arg1[%c23] : memref<99xf32, #tpu.memory_space<smem>>
    %c24 = arith.constant 24 : index
    %38 = memref.load %arg1[%c24] : memref<99xf32, #tpu.memory_space<smem>>
    %c25 = arith.constant 25 : index
    %39 = memref.load %arg1[%c25] : memref<99xf32, #tpu.memory_space<smem>>
    %c26 = arith.constant 26 : index
    %40 = memref.load %arg1[%c26] : memref<99xf32, #tpu.memory_space<smem>>
    %c27 = arith.constant 27 : index
    %41 = memref.load %arg1[%c27] : memref<99xf32, #tpu.memory_space<smem>>
    %c28 = arith.constant 28 : index
    %42 = memref.load %arg1[%c28] : memref<99xf32, #tpu.memory_space<smem>>
    %c29 = arith.constant 29 : index
    %43 = memref.load %arg1[%c29] : memref<99xf32, #tpu.memory_space<smem>>
    %c30 = arith.constant 30 : index
    %44 = memref.load %arg1[%c30] : memref<99xf32, #tpu.memory_space<smem>>
    %c31 = arith.constant 31 : index
    %45 = memref.load %arg1[%c31] : memref<99xf32, #tpu.memory_space<smem>>
    %c32 = arith.constant 32 : index
    %46 = memref.load %arg1[%c32] : memref<99xf32, #tpu.memory_space<smem>>
    %c33 = arith.constant 33 : index
    %47 = memref.load %arg1[%c33] : memref<99xf32, #tpu.memory_space<smem>>
    %c34 = arith.constant 34 : index
    %48 = memref.load %arg1[%c34] : memref<99xf32, #tpu.memory_space<smem>>
    %c35 = arith.constant 35 : index
    %49 = memref.load %arg1[%c35] : memref<99xf32, #tpu.memory_space<smem>>
    %c36 = arith.constant 36 : index
    %50 = memref.load %arg1[%c36] : memref<99xf32, #tpu.memory_space<smem>>
    %c37 = arith.constant 37 : index
    %51 = memref.load %arg1[%c37] : memref<99xf32, #tpu.memory_space<smem>>
    %c38 = arith.constant 38 : index
    %52 = memref.load %arg1[%c38] : memref<99xf32, #tpu.memory_space<smem>>
    %c39 = arith.constant 39 : index
    %53 = memref.load %arg1[%c39] : memref<99xf32, #tpu.memory_space<smem>>
    %c40 = arith.constant 40 : index
    %54 = memref.load %arg1[%c40] : memref<99xf32, #tpu.memory_space<smem>>
    %c41 = arith.constant 41 : index
    %55 = memref.load %arg1[%c41] : memref<99xf32, #tpu.memory_space<smem>>
    %c42 = arith.constant 42 : index
    %56 = memref.load %arg1[%c42] : memref<99xf32, #tpu.memory_space<smem>>
    %c43 = arith.constant 43 : index
    %57 = memref.load %arg1[%c43] : memref<99xf32, #tpu.memory_space<smem>>
    %c44 = arith.constant 44 : index
    %58 = memref.load %arg1[%c44] : memref<99xf32, #tpu.memory_space<smem>>
    %c45 = arith.constant 45 : index
    %59 = memref.load %arg1[%c45] : memref<99xf32, #tpu.memory_space<smem>>
    %c46 = arith.constant 46 : index
    %60 = memref.load %arg1[%c46] : memref<99xf32, #tpu.memory_space<smem>>
    %c47 = arith.constant 47 : index
    %61 = memref.load %arg1[%c47] : memref<99xf32, #tpu.memory_space<smem>>
    %c48 = arith.constant 48 : index
    %62 = memref.load %arg1[%c48] : memref<99xf32, #tpu.memory_space<smem>>
    %c49 = arith.constant 49 : index
    %63 = memref.load %arg1[%c49] : memref<99xf32, #tpu.memory_space<smem>>
    %c50 = arith.constant 50 : index
    %64 = memref.load %arg1[%c50] : memref<99xf32, #tpu.memory_space<smem>>
    %c51 = arith.constant 51 : index
    %65 = memref.load %arg1[%c51] : memref<99xf32, #tpu.memory_space<smem>>
    %c52 = arith.constant 52 : index
    %66 = memref.load %arg1[%c52] : memref<99xf32, #tpu.memory_space<smem>>
    %c53 = arith.constant 53 : index
    %67 = memref.load %arg1[%c53] : memref<99xf32, #tpu.memory_space<smem>>
    %c54 = arith.constant 54 : index
    %68 = memref.load %arg1[%c54] : memref<99xf32, #tpu.memory_space<smem>>
    %c55 = arith.constant 55 : index
    %69 = memref.load %arg1[%c55] : memref<99xf32, #tpu.memory_space<smem>>
    %c56 = arith.constant 56 : index
    %70 = memref.load %arg1[%c56] : memref<99xf32, #tpu.memory_space<smem>>
    %c57 = arith.constant 57 : index
    %71 = memref.load %arg1[%c57] : memref<99xf32, #tpu.memory_space<smem>>
    %c58 = arith.constant 58 : index
    %72 = memref.load %arg1[%c58] : memref<99xf32, #tpu.memory_space<smem>>
    %c59 = arith.constant 59 : index
    %73 = memref.load %arg1[%c59] : memref<99xf32, #tpu.memory_space<smem>>
    %c60 = arith.constant 60 : index
    %74 = memref.load %arg1[%c60] : memref<99xf32, #tpu.memory_space<smem>>
    %c61 = arith.constant 61 : index
    %75 = memref.load %arg1[%c61] : memref<99xf32, #tpu.memory_space<smem>>
    %c62 = arith.constant 62 : index
    %76 = memref.load %arg1[%c62] : memref<99xf32, #tpu.memory_space<smem>>
    %c63 = arith.constant 63 : index
    %77 = memref.load %arg1[%c63] : memref<99xf32, #tpu.memory_space<smem>>
    %c64 = arith.constant 64 : index
    %78 = memref.load %arg1[%c64] : memref<99xf32, #tpu.memory_space<smem>>
    %c65 = arith.constant 65 : index
    %79 = memref.load %arg1[%c65] : memref<99xf32, #tpu.memory_space<smem>>
    %c66 = arith.constant 66 : index
    %80 = memref.load %arg1[%c66] : memref<99xf32, #tpu.memory_space<smem>>
    %c67 = arith.constant 67 : index
    %81 = memref.load %arg1[%c67] : memref<99xf32, #tpu.memory_space<smem>>
    %c68 = arith.constant 68 : index
    %82 = memref.load %arg1[%c68] : memref<99xf32, #tpu.memory_space<smem>>
    %c69 = arith.constant 69 : index
    %83 = memref.load %arg1[%c69] : memref<99xf32, #tpu.memory_space<smem>>
    %c70 = arith.constant 70 : index
    %84 = memref.load %arg1[%c70] : memref<99xf32, #tpu.memory_space<smem>>
    %c71 = arith.constant 71 : index
    %85 = memref.load %arg1[%c71] : memref<99xf32, #tpu.memory_space<smem>>
    %c72 = arith.constant 72 : index
    %86 = memref.load %arg1[%c72] : memref<99xf32, #tpu.memory_space<smem>>
    %c73 = arith.constant 73 : index
    %87 = memref.load %arg1[%c73] : memref<99xf32, #tpu.memory_space<smem>>
    %c74 = arith.constant 74 : index
    %88 = memref.load %arg1[%c74] : memref<99xf32, #tpu.memory_space<smem>>
    %c75 = arith.constant 75 : index
    %89 = memref.load %arg1[%c75] : memref<99xf32, #tpu.memory_space<smem>>
    %c76 = arith.constant 76 : index
    %90 = memref.load %arg1[%c76] : memref<99xf32, #tpu.memory_space<smem>>
    %c77 = arith.constant 77 : index
    %91 = memref.load %arg1[%c77] : memref<99xf32, #tpu.memory_space<smem>>
    %c78 = arith.constant 78 : index
    %92 = memref.load %arg1[%c78] : memref<99xf32, #tpu.memory_space<smem>>
    %c79 = arith.constant 79 : index
    %93 = memref.load %arg1[%c79] : memref<99xf32, #tpu.memory_space<smem>>
    %c80 = arith.constant 80 : index
    %94 = memref.load %arg1[%c80] : memref<99xf32, #tpu.memory_space<smem>>
    %c81 = arith.constant 81 : index
    %95 = memref.load %arg1[%c81] : memref<99xf32, #tpu.memory_space<smem>>
    %c82 = arith.constant 82 : index
    %96 = memref.load %arg1[%c82] : memref<99xf32, #tpu.memory_space<smem>>
    %c83 = arith.constant 83 : index
    %97 = memref.load %arg1[%c83] : memref<99xf32, #tpu.memory_space<smem>>
    %c84 = arith.constant 84 : index
    %98 = memref.load %arg1[%c84] : memref<99xf32, #tpu.memory_space<smem>>
    %c85 = arith.constant 85 : index
    %99 = memref.load %arg1[%c85] : memref<99xf32, #tpu.memory_space<smem>>
    %c86 = arith.constant 86 : index
    %100 = memref.load %arg1[%c86] : memref<99xf32, #tpu.memory_space<smem>>
    %c87 = arith.constant 87 : index
    %101 = memref.load %arg1[%c87] : memref<99xf32, #tpu.memory_space<smem>>
    %c88 = arith.constant 88 : index
    %102 = memref.load %arg1[%c88] : memref<99xf32, #tpu.memory_space<smem>>
    %c89 = arith.constant 89 : index
    %103 = memref.load %arg1[%c89] : memref<99xf32, #tpu.memory_space<smem>>
    %c90 = arith.constant 90 : index
    %104 = memref.load %arg1[%c90] : memref<99xf32, #tpu.memory_space<smem>>
    %c91 = arith.constant 91 : index
    %105 = memref.load %arg1[%c91] : memref<99xf32, #tpu.memory_space<smem>>
    %c92 = arith.constant 92 : index
    %106 = memref.load %arg1[%c92] : memref<99xf32, #tpu.memory_space<smem>>
    %c93 = arith.constant 93 : index
    %107 = memref.load %arg1[%c93] : memref<99xf32, #tpu.memory_space<smem>>
    %c94 = arith.constant 94 : index
    %108 = memref.load %arg1[%c94] : memref<99xf32, #tpu.memory_space<smem>>
    %c95 = arith.constant 95 : index
    %109 = memref.load %arg1[%c95] : memref<99xf32, #tpu.memory_space<smem>>
    %c96 = arith.constant 96 : index
    %110 = memref.load %arg1[%c96] : memref<99xf32, #tpu.memory_space<smem>>
    %c97 = arith.constant 97 : index
    %111 = memref.load %arg1[%c97] : memref<99xf32, #tpu.memory_space<smem>>
    %c98 = arith.constant 98 : index
    %112 = memref.load %arg1[%c98] : memref<99xf32, #tpu.memory_space<smem>>
    %cst_16 = arith.constant 0.000000e+00 : f32
    %113 = vector.broadcast %cst_16 : f32 to vector<16x16xf32>
    %c0_17 = arith.constant 0 : index
    %c0_18 = arith.constant 0 : index
    %c0_19 = arith.constant 0 : index
    %114 = vector.load %arg4[%c0_17, %c0_18, %c0_19] : memref<2x22x22xf32, #tpu.memory_space<vmem>>, vector<1x16x22xf32>
    %115 = vector.shape_cast %114 : vector<1x16x22xf32> to vector<16x22xf32>
    %116 = vector.extract_strided_slice %115 {offsets = [0, 0], sizes = [16, 16], strides = [1, 1]} : vector<16x22xf32> to vector<16x16xf32>
    %117 = vector.broadcast %14 : f32 to vector<16x16xf32>
    %118 = arith.mulf %117, %116 : vector<16x16xf32>
    %119 = arith.addf %113, %118 : vector<16x16xf32>
    %120 = vector.extract_strided_slice %115 {offsets = [0, 1], sizes = [16, 16], strides = [1, 1]} : vector<16x22xf32> to vector<16x16xf32>
    %121 = vector.broadcast %15 : f32 to vector<16x16xf32>
    %122 = arith.mulf %121, %120 : vector<16x16xf32>
    %123 = arith.addf %119, %122 : vector<16x16xf32>
    %124 = vector.extract_strided_slice %115 {offsets = [0, 2], sizes = [16, 16], strides = [1, 1]} : vector<16x22xf32> to vector<16x16xf32>
    %125 = vector.broadcast %16 : f32 to vector<16x16xf32>
    %126 = arith.mulf %125, %124 : vector<16x16xf32>
    %127 = arith.addf %123, %126 : vector<16x16xf32>
    %128 = vector.extract_strided_slice %115 {offsets = [0, 3], sizes = [16, 16], strides = [1, 1]} : vector<16x22xf32> to vector<16x16xf32>
    %129 = vector.broadcast %17 : f32 to vector<16x16xf32>
    %130 = arith.mulf %129, %128 : vector<16x16xf32>
    %131 = arith.addf %127, %130 : vector<16x16xf32>
    %132 = vector.extract_strided_slice %115 {offsets = [0, 4], sizes = [16, 16], strides = [1, 1]} : vector<16x22xf32> to vector<16x16xf32>
    %133 = vector.broadcast %18 : f32 to vector<16x16xf32>
    %134 = arith.mulf %133, %132 : vector<16x16xf32>
    %135 = arith.addf %131, %134 : vector<16x16xf32>
    %136 = vector.extract_strided_slice %115 {offsets = [0, 5], sizes = [16, 16], strides = [1, 1]} : vector<16x22xf32> to vector<16x16xf32>
    %137 = vector.broadcast %19 : f32 to vector<16x16xf32>
    %138 = arith.mulf %137, %136 : vector<16x16xf32>
    %139 = arith.addf %135, %138 : vector<16x16xf32>
    %140 = vector.extract_strided_slice %115 {offsets = [0, 6], sizes = [16, 16], strides = [1, 1]} : vector<16x22xf32> to vector<16x16xf32>
    %141 = vector.broadcast %20 : f32 to vector<16x16xf32>
    %142 = arith.mulf %141, %140 : vector<16x16xf32>
    %143 = arith.addf %139, %142 : vector<16x16xf32>
    %c0_20 = arith.constant 0 : index
    %c1_21 = arith.constant 1 : index
    %c0_22 = arith.constant 0 : index
    %144 = vector.load %arg4[%c0_20, %c1_21, %c0_22] : memref<2x22x22xf32, #tpu.memory_space<vmem>>, vector<1x16x22xf32>
    %145 = vector.shape_cast %144 : vector<1x16x22xf32> to vector<16x22xf32>
    %146 = vector.extract_strided_slice %145 {offsets = [0, 0], sizes = [16, 16], strides = [1, 1]} : vector<16x22xf32> to vector<16x16xf32>
    %147 = vector.broadcast %21 : f32 to vector<16x16xf32>
    %148 = arith.mulf %147, %146 : vector<16x16xf32>
    %149 = arith.addf %143, %148 : vector<16x16xf32>
    %150 = vector.extract_strided_slice %145 {offsets = [0, 1], sizes = [16, 16], strides = [1, 1]} : vector<16x22xf32> to vector<16x16xf32>
    %151 = vector.broadcast %22 : f32 to vector<16x16xf32>
    %152 = arith.mulf %151, %150 : vector<16x16xf32>
    %153 = arith.addf %149, %152 : vector<16x16xf32>
    %154 = vector.extract_strided_slice %145 {offsets = [0, 2], sizes = [16, 16], strides = [1, 1]} : vector<16x22xf32> to vector<16x16xf32>
    %155 = vector.broadcast %23 : f32 to vector<16x16xf32>
    %156 = arith.mulf %155, %154 : vector<16x16xf32>
    %157 = arith.addf %153, %156 : vector<16x16xf32>
    %158 = vector.extract_strided_slice %145 {offsets = [0, 3], sizes = [16, 16], strides = [1, 1]} : vector<16x22xf32> to vector<16x16xf32>
    %159 = vector.broadcast %24 : f32 to vector<16x16xf32>
    %160 = arith.mulf %159, %158 : vector<16x16xf32>
    %161 = arith.addf %157, %160 : vector<16x16xf32>
    %162 = vector.extract_strided_slice %145 {offsets = [0, 4], sizes = [16, 16], strides = [1, 1]} : vector<16x22xf32> to vector<16x16xf32>
    %163 = vector.broadcast %25 : f32 to vector<16x16xf32>
    %164 = arith.mulf %163, %162 : vector<16x16xf32>
    %165 = arith.addf %161, %164 : vector<16x16xf32>
    %166 = vector.extract_strided_slice %145 {offsets = [0, 5], sizes = [16, 16], strides = [1, 1]} : vector<16x22xf32> to vector<16x16xf32>
    %167 = vector.broadcast %26 : f32 to vector<16x16xf32>
    %168 = arith.mulf %167, %166 : vector<16x16xf32>
    %169 = arith.addf %165, %168 : vector<16x16xf32>
    %170 = vector.extract_strided_slice %145 {offsets = [0, 6], sizes = [16, 16], strides = [1, 1]} : vector<16x22xf32> to vector<16x16xf32>
    %171 = vector.broadcast %27 : f32 to vector<16x16xf32>
    %172 = arith.mulf %171, %170 : vector<16x16xf32>
    %173 = arith.addf %169, %172 : vector<16x16xf32>
    %c0_23 = arith.constant 0 : index
    %c2_24 = arith.constant 2 : index
    %c0_25 = arith.constant 0 : index
    %174 = vector.load %arg4[%c0_23, %c2_24, %c0_25] : memref<2x22x22xf32, #tpu.memory_space<vmem>>, vector<1x16x22xf32>
    %175 = vector.shape_cast %174 : vector<1x16x22xf32> to vector<16x22xf32>
    %176 = vector.extract_strided_slice %175 {offsets = [0, 0], sizes = [16, 16], strides = [1, 1]} : vector<16x22xf32> to vector<16x16xf32>
    %177 = vector.broadcast %28 : f32 to vector<16x16xf32>
    %178 = arith.mulf %177, %176 : vector<16x16xf32>
    %179 = arith.addf %173, %178 : vector<16x16xf32>
    %180 = vector.extract_strided_slice %175 {offsets = [0, 1], sizes = [16, 16], strides = [1, 1]} : vector<16x22xf32> to vector<16x16xf32>
    %181 = vector.broadcast %29 : f32 to vector<16x16xf32>
    %182 = arith.mulf %181, %180 : vector<16x16xf32>
    %183 = arith.addf %179, %182 : vector<16x16xf32>
    %184 = vector.extract_strided_slice %175 {offsets = [0, 2], sizes = [16, 16], strides = [1, 1]} : vector<16x22xf32> to vector<16x16xf32>
    %185 = vector.broadcast %30 : f32 to vector<16x16xf32>
    %186 = arith.mulf %185, %184 : vector<16x16xf32>
    %187 = arith.addf %183, %186 : vector<16x16xf32>
    %188 = vector.extract_strided_slice %175 {offsets = [0, 3], sizes = [16, 16], strides = [1, 1]} : vector<16x22xf32> to vector<16x16xf32>
    %189 = vector.broadcast %31 : f32 to vector<16x16xf32>
    %190 = arith.mulf %189, %188 : vector<16x16xf32>
    %191 = arith.addf %187, %190 : vector<16x16xf32>
    %192 = vector.extract_strided_slice %175 {offsets = [0, 4], sizes = [16, 16], strides = [1, 1]} : vector<16x22xf32> to vector<16x16xf32>
    %193 = vector.broadcast %32 : f32 to vector<16x16xf32>
    %194 = arith.mulf %193, %192 : vector<16x16xf32>
    %195 = arith.addf %191, %194 : vector<16x16xf32>
    %196 = vector.extract_strided_slice %175 {offsets = [0, 5], sizes = [16, 16], strides = [1, 1]} : vector<16x22xf32> to vector<16x16xf32>
    %197 = vector.broadcast %33 : f32 to vector<16x16xf32>
    %198 = arith.mulf %197, %196 : vector<16x16xf32>
    %199 = arith.addf %195, %198 : vector<16x16xf32>
    %200 = vector.extract_strided_slice %175 {offsets = [0, 6], sizes = [16, 16], strides = [1, 1]} : vector<16x22xf32> to vector<16x16xf32>
    %201 = vector.broadcast %34 : f32 to vector<16x16xf32>
    %202 = arith.mulf %201, %200 : vector<16x16xf32>
    %203 = arith.addf %199, %202 : vector<16x16xf32>
    %c0_26 = arith.constant 0 : index
    %c3_27 = arith.constant 3 : index
    %c0_28 = arith.constant 0 : index
    %204 = vector.load %arg4[%c0_26, %c3_27, %c0_28] : memref<2x22x22xf32, #tpu.memory_space<vmem>>, vector<1x16x22xf32>
    %205 = vector.shape_cast %204 : vector<1x16x22xf32> to vector<16x22xf32>
    %206 = vector.extract_strided_slice %205 {offsets = [0, 0], sizes = [16, 16], strides = [1, 1]} : vector<16x22xf32> to vector<16x16xf32>
    %207 = vector.broadcast %35 : f32 to vector<16x16xf32>
    %208 = arith.mulf %207, %206 : vector<16x16xf32>
    %209 = arith.addf %203, %208 : vector<16x16xf32>
    %210 = vector.extract_strided_slice %205 {offsets = [0, 1], sizes = [16, 16], strides = [1, 1]} : vector<16x22xf32> to vector<16x16xf32>
    %211 = vector.broadcast %36 : f32 to vector<16x16xf32>
    %212 = arith.mulf %211, %210 : vector<16x16xf32>
    %213 = arith.addf %209, %212 : vector<16x16xf32>
    %214 = vector.extract_strided_slice %205 {offsets = [0, 2], sizes = [16, 16], strides = [1, 1]} : vector<16x22xf32> to vector<16x16xf32>
    %215 = vector.broadcast %37 : f32 to vector<16x16xf32>
    %216 = arith.mulf %215, %214 : vector<16x16xf32>
    %217 = arith.addf %213, %216 : vector<16x16xf32>
    %218 = vector.extract_strided_slice %205 {offsets = [0, 3], sizes = [16, 16], strides = [1, 1]} : vector<16x22xf32> to vector<16x16xf32>
    %219 = vector.broadcast %38 : f32 to vector<16x16xf32>
    %220 = arith.mulf %219, %218 : vector<16x16xf32>
    %221 = arith.addf %217, %220 : vector<16x16xf32>
    %222 = vector.extract_strided_slice %205 {offsets = [0, 4], sizes = [16, 16], strides = [1, 1]} : vector<16x22xf32> to vector<16x16xf32>
    %223 = vector.broadcast %39 : f32 to vector<16x16xf32>
    %224 = arith.mulf %223, %222 : vector<16x16xf32>
    %225 = arith.addf %221, %224 : vector<16x16xf32>
    %226 = vector.extract_strided_slice %205 {offsets = [0, 5], sizes = [16, 16], strides = [1, 1]} : vector<16x22xf32> to vector<16x16xf32>
    %227 = vector.broadcast %40 : f32 to vector<16x16xf32>
    %228 = arith.mulf %227, %226 : vector<16x16xf32>
    %229 = arith.addf %225, %228 : vector<16x16xf32>
    %230 = vector.extract_strided_slice %205 {offsets = [0, 6], sizes = [16, 16], strides = [1, 1]} : vector<16x22xf32> to vector<16x16xf32>
    %231 = vector.broadcast %41 : f32 to vector<16x16xf32>
    %232 = arith.mulf %231, %230 : vector<16x16xf32>
    %233 = arith.addf %229, %232 : vector<16x16xf32>
    %c0_29 = arith.constant 0 : index
    %c4_30 = arith.constant 4 : index
    %c0_31 = arith.constant 0 : index
    %234 = vector.load %arg4[%c0_29, %c4_30, %c0_31] : memref<2x22x22xf32, #tpu.memory_space<vmem>>, vector<1x16x22xf32>
    %235 = vector.shape_cast %234 : vector<1x16x22xf32> to vector<16x22xf32>
    %236 = vector.extract_strided_slice %235 {offsets = [0, 0], sizes = [16, 16], strides = [1, 1]} : vector<16x22xf32> to vector<16x16xf32>
    %237 = vector.broadcast %42 : f32 to vector<16x16xf32>
    %238 = arith.mulf %237, %236 : vector<16x16xf32>
    %239 = arith.addf %233, %238 : vector<16x16xf32>
    %240 = vector.extract_strided_slice %235 {offsets = [0, 1], sizes = [16, 16], strides = [1, 1]} : vector<16x22xf32> to vector<16x16xf32>
    %241 = vector.broadcast %43 : f32 to vector<16x16xf32>
    %242 = arith.mulf %241, %240 : vector<16x16xf32>
    %243 = arith.addf %239, %242 : vector<16x16xf32>
    %244 = vector.extract_strided_slice %235 {offsets = [0, 2], sizes = [16, 16], strides = [1, 1]} : vector<16x22xf32> to vector<16x16xf32>
    %245 = vector.broadcast %44 : f32 to vector<16x16xf32>
    %246 = arith.mulf %245, %244 : vector<16x16xf32>
    %247 = arith.addf %243, %246 : vector<16x16xf32>
    %248 = vector.extract_strided_slice %235 {offsets = [0, 3], sizes = [16, 16], strides = [1, 1]} : vector<16x22xf32> to vector<16x16xf32>
    %249 = vector.broadcast %45 : f32 to vector<16x16xf32>
    %250 = arith.mulf %249, %248 : vector<16x16xf32>
    %251 = arith.addf %247, %250 : vector<16x16xf32>
    %252 = vector.extract_strided_slice %235 {offsets = [0, 4], sizes = [16, 16], strides = [1, 1]} : vector<16x22xf32> to vector<16x16xf32>
    %253 = vector.broadcast %46 : f32 to vector<16x16xf32>
    %254 = arith.mulf %253, %252 : vector<16x16xf32>
    %255 = arith.addf %251, %254 : vector<16x16xf32>
    %256 = vector.extract_strided_slice %235 {offsets = [0, 5], sizes = [16, 16], strides = [1, 1]} : vector<16x22xf32> to vector<16x16xf32>
    %257 = vector.broadcast %47 : f32 to vector<16x16xf32>
    %258 = arith.mulf %257, %256 : vector<16x16xf32>
    %259 = arith.addf %255, %258 : vector<16x16xf32>
    %260 = vector.extract_strided_slice %235 {offsets = [0, 6], sizes = [16, 16], strides = [1, 1]} : vector<16x22xf32> to vector<16x16xf32>
    %261 = vector.broadcast %48 : f32 to vector<16x16xf32>
    %262 = arith.mulf %261, %260 : vector<16x16xf32>
    %263 = arith.addf %259, %262 : vector<16x16xf32>
    %c0_32 = arith.constant 0 : index
    %c5_33 = arith.constant 5 : index
    %c0_34 = arith.constant 0 : index
    %264 = vector.load %arg4[%c0_32, %c5_33, %c0_34] : memref<2x22x22xf32, #tpu.memory_space<vmem>>, vector<1x16x22xf32>
    %265 = vector.shape_cast %264 : vector<1x16x22xf32> to vector<16x22xf32>
    %266 = vector.extract_strided_slice %265 {offsets = [0, 0], sizes = [16, 16], strides = [1, 1]} : vector<16x22xf32> to vector<16x16xf32>
    %267 = vector.broadcast %49 : f32 to vector<16x16xf32>
    %268 = arith.mulf %267, %266 : vector<16x16xf32>
    %269 = arith.addf %263, %268 : vector<16x16xf32>
    %270 = vector.extract_strided_slice %265 {offsets = [0, 1], sizes = [16, 16], strides = [1, 1]} : vector<16x22xf32> to vector<16x16xf32>
    %271 = vector.broadcast %50 : f32 to vector<16x16xf32>
    %272 = arith.mulf %271, %270 : vector<16x16xf32>
    %273 = arith.addf %269, %272 : vector<16x16xf32>
    %274 = vector.extract_strided_slice %265 {offsets = [0, 2], sizes = [16, 16], strides = [1, 1]} : vector<16x22xf32> to vector<16x16xf32>
    %275 = vector.broadcast %51 : f32 to vector<16x16xf32>
    %276 = arith.mulf %275, %274 : vector<16x16xf32>
    %277 = arith.addf %273, %276 : vector<16x16xf32>
    %278 = vector.extract_strided_slice %265 {offsets = [0, 3], sizes = [16, 16], strides = [1, 1]} : vector<16x22xf32> to vector<16x16xf32>
    %279 = vector.broadcast %52 : f32 to vector<16x16xf32>
    %280 = arith.mulf %279, %278 : vector<16x16xf32>
    %281 = arith.addf %277, %280 : vector<16x16xf32>
    %282 = vector.extract_strided_slice %265 {offsets = [0, 4], sizes = [16, 16], strides = [1, 1]} : vector<16x22xf32> to vector<16x16xf32>
    %283 = vector.broadcast %53 : f32 to vector<16x16xf32>
    %284 = arith.mulf %283, %282 : vector<16x16xf32>
    %285 = arith.addf %281, %284 : vector<16x16xf32>
    %286 = vector.extract_strided_slice %265 {offsets = [0, 5], sizes = [16, 16], strides = [1, 1]} : vector<16x22xf32> to vector<16x16xf32>
    %287 = vector.broadcast %54 : f32 to vector<16x16xf32>
    %288 = arith.mulf %287, %286 : vector<16x16xf32>
    %289 = arith.addf %285, %288 : vector<16x16xf32>
    %290 = vector.extract_strided_slice %265 {offsets = [0, 6], sizes = [16, 16], strides = [1, 1]} : vector<16x22xf32> to vector<16x16xf32>
    %291 = vector.broadcast %55 : f32 to vector<16x16xf32>
    %292 = arith.mulf %291, %290 : vector<16x16xf32>
    %293 = arith.addf %289, %292 : vector<16x16xf32>
    %c0_35 = arith.constant 0 : index
    %c6_36 = arith.constant 6 : index
    %c0_37 = arith.constant 0 : index
    %294 = vector.load %arg4[%c0_35, %c6_36, %c0_37] : memref<2x22x22xf32, #tpu.memory_space<vmem>>, vector<1x16x22xf32>
    %295 = vector.shape_cast %294 : vector<1x16x22xf32> to vector<16x22xf32>
    %296 = vector.extract_strided_slice %295 {offsets = [0, 0], sizes = [16, 16], strides = [1, 1]} : vector<16x22xf32> to vector<16x16xf32>
    %297 = vector.broadcast %56 : f32 to vector<16x16xf32>
    %298 = arith.mulf %297, %296 : vector<16x16xf32>
    %299 = arith.addf %293, %298 : vector<16x16xf32>
    %300 = vector.extract_strided_slice %295 {offsets = [0, 1], sizes = [16, 16], strides = [1, 1]} : vector<16x22xf32> to vector<16x16xf32>
    %301 = vector.broadcast %57 : f32 to vector<16x16xf32>
    %302 = arith.mulf %301, %300 : vector<16x16xf32>
    %303 = arith.addf %299, %302 : vector<16x16xf32>
    %304 = vector.extract_strided_slice %295 {offsets = [0, 2], sizes = [16, 16], strides = [1, 1]} : vector<16x22xf32> to vector<16x16xf32>
    %305 = vector.broadcast %58 : f32 to vector<16x16xf32>
    %306 = arith.mulf %305, %304 : vector<16x16xf32>
    %307 = arith.addf %303, %306 : vector<16x16xf32>
    %308 = vector.extract_strided_slice %295 {offsets = [0, 3], sizes = [16, 16], strides = [1, 1]} : vector<16x22xf32> to vector<16x16xf32>
    %309 = vector.broadcast %59 : f32 to vector<16x16xf32>
    %310 = arith.mulf %309, %308 : vector<16x16xf32>
    %311 = arith.addf %307, %310 : vector<16x16xf32>
    %312 = vector.extract_strided_slice %295 {offsets = [0, 4], sizes = [16, 16], strides = [1, 1]} : vector<16x22xf32> to vector<16x16xf32>
    %313 = vector.broadcast %60 : f32 to vector<16x16xf32>
    %314 = arith.mulf %313, %312 : vector<16x16xf32>
    %315 = arith.addf %311, %314 : vector<16x16xf32>
    %316 = vector.extract_strided_slice %295 {offsets = [0, 5], sizes = [16, 16], strides = [1, 1]} : vector<16x22xf32> to vector<16x16xf32>
    %317 = vector.broadcast %61 : f32 to vector<16x16xf32>
    %318 = arith.mulf %317, %316 : vector<16x16xf32>
    %319 = arith.addf %315, %318 : vector<16x16xf32>
    %320 = vector.extract_strided_slice %295 {offsets = [0, 6], sizes = [16, 16], strides = [1, 1]} : vector<16x22xf32> to vector<16x16xf32>
    %321 = vector.broadcast %62 : f32 to vector<16x16xf32>
    %322 = arith.mulf %321, %320 : vector<16x16xf32>
    %323 = arith.addf %319, %322 : vector<16x16xf32>
    %c1_38 = arith.constant 1 : index
    %c0_39 = arith.constant 0 : index
    %c0_40 = arith.constant 0 : index
    %324 = vector.load %arg4[%c1_38, %c0_39, %c0_40] : memref<2x22x22xf32, #tpu.memory_space<vmem>>, vector<1x16x22xf32>
    %325 = vector.shape_cast %324 : vector<1x16x22xf32> to vector<16x22xf32>
    %326 = vector.extract_strided_slice %325 {offsets = [0, 0], sizes = [16, 16], strides = [1, 1]} : vector<16x22xf32> to vector<16x16xf32>
    %327 = vector.broadcast %63 : f32 to vector<16x16xf32>
    %328 = arith.mulf %327, %326 : vector<16x16xf32>
    %329 = arith.addf %323, %328 : vector<16x16xf32>
    %330 = vector.extract_strided_slice %325 {offsets = [0, 1], sizes = [16, 16], strides = [1, 1]} : vector<16x22xf32> to vector<16x16xf32>
    %331 = vector.broadcast %64 : f32 to vector<16x16xf32>
    %332 = arith.mulf %331, %330 : vector<16x16xf32>
    %333 = arith.addf %329, %332 : vector<16x16xf32>
    %334 = vector.extract_strided_slice %325 {offsets = [0, 2], sizes = [16, 16], strides = [1, 1]} : vector<16x22xf32> to vector<16x16xf32>
    %335 = vector.broadcast %65 : f32 to vector<16x16xf32>
    %336 = arith.mulf %335, %334 : vector<16x16xf32>
    %337 = arith.addf %333, %336 : vector<16x16xf32>
    %338 = vector.extract_strided_slice %325 {offsets = [0, 3], sizes = [16, 16], strides = [1, 1]} : vector<16x22xf32> to vector<16x16xf32>
    %339 = vector.broadcast %66 : f32 to vector<16x16xf32>
    %340 = arith.mulf %339, %338 : vector<16x16xf32>
    %341 = arith.addf %337, %340 : vector<16x16xf32>
    %342 = vector.extract_strided_slice %325 {offsets = [0, 4], sizes = [16, 16], strides = [1, 1]} : vector<16x22xf32> to vector<16x16xf32>
    %343 = vector.broadcast %67 : f32 to vector<16x16xf32>
    %344 = arith.mulf %343, %342 : vector<16x16xf32>
    %345 = arith.addf %341, %344 : vector<16x16xf32>
    %346 = vector.extract_strided_slice %325 {offsets = [0, 5], sizes = [16, 16], strides = [1, 1]} : vector<16x22xf32> to vector<16x16xf32>
    %347 = vector.broadcast %68 : f32 to vector<16x16xf32>
    %348 = arith.mulf %347, %346 : vector<16x16xf32>
    %349 = arith.addf %345, %348 : vector<16x16xf32>
    %350 = vector.extract_strided_slice %325 {offsets = [0, 6], sizes = [16, 16], strides = [1, 1]} : vector<16x22xf32> to vector<16x16xf32>
    %351 = vector.broadcast %69 : f32 to vector<16x16xf32>
    %352 = arith.mulf %351, %350 : vector<16x16xf32>
    %353 = arith.addf %349, %352 : vector<16x16xf32>
    %c1_41 = arith.constant 1 : index
    %c1_42 = arith.constant 1 : index
    %c0_43 = arith.constant 0 : index
    %354 = vector.load %arg4[%c1_41, %c1_42, %c0_43] : memref<2x22x22xf32, #tpu.memory_space<vmem>>, vector<1x16x22xf32>
    %355 = vector.shape_cast %354 : vector<1x16x22xf32> to vector<16x22xf32>
    %356 = vector.extract_strided_slice %355 {offsets = [0, 0], sizes = [16, 16], strides = [1, 1]} : vector<16x22xf32> to vector<16x16xf32>
    %357 = vector.broadcast %70 : f32 to vector<16x16xf32>
    %358 = arith.mulf %357, %356 : vector<16x16xf32>
    %359 = arith.addf %353, %358 : vector<16x16xf32>
    %360 = vector.extract_strided_slice %355 {offsets = [0, 1], sizes = [16, 16], strides = [1, 1]} : vector<16x22xf32> to vector<16x16xf32>
    %361 = vector.broadcast %71 : f32 to vector<16x16xf32>
    %362 = arith.mulf %361, %360 : vector<16x16xf32>
    %363 = arith.addf %359, %362 : vector<16x16xf32>
    %364 = vector.extract_strided_slice %355 {offsets = [0, 2], sizes = [16, 16], strides = [1, 1]} : vector<16x22xf32> to vector<16x16xf32>
    %365 = vector.broadcast %72 : f32 to vector<16x16xf32>
    %366 = arith.mulf %365, %364 : vector<16x16xf32>
    %367 = arith.addf %363, %366 : vector<16x16xf32>
    %368 = vector.extract_strided_slice %355 {offsets = [0, 3], sizes = [16, 16], strides = [1, 1]} : vector<16x22xf32> to vector<16x16xf32>
    %369 = vector.broadcast %73 : f32 to vector<16x16xf32>
    %370 = arith.mulf %369, %368 : vector<16x16xf32>
    %371 = arith.addf %367, %370 : vector<16x16xf32>
    %372 = vector.extract_strided_slice %355 {offsets = [0, 4], sizes = [16, 16], strides = [1, 1]} : vector<16x22xf32> to vector<16x16xf32>
    %373 = vector.broadcast %74 : f32 to vector<16x16xf32>
    %374 = arith.mulf %373, %372 : vector<16x16xf32>
    %375 = arith.addf %371, %374 : vector<16x16xf32>
    %376 = vector.extract_strided_slice %355 {offsets = [0, 5], sizes = [16, 16], strides = [1, 1]} : vector<16x22xf32> to vector<16x16xf32>
    %377 = vector.broadcast %75 : f32 to vector<16x16xf32>
    %378 = arith.mulf %377, %376 : vector<16x16xf32>
    %379 = arith.addf %375, %378 : vector<16x16xf32>
    %380 = vector.extract_strided_slice %355 {offsets = [0, 6], sizes = [16, 16], strides = [1, 1]} : vector<16x22xf32> to vector<16x16xf32>
    %381 = vector.broadcast %76 : f32 to vector<16x16xf32>
    %382 = arith.mulf %381, %380 : vector<16x16xf32>
    %383 = arith.addf %379, %382 : vector<16x16xf32>
    %c1_44 = arith.constant 1 : index
    %c2_45 = arith.constant 2 : index
    %c0_46 = arith.constant 0 : index
    %384 = vector.load %arg4[%c1_44, %c2_45, %c0_46] : memref<2x22x22xf32, #tpu.memory_space<vmem>>, vector<1x16x22xf32>
    %385 = vector.shape_cast %384 : vector<1x16x22xf32> to vector<16x22xf32>
    %386 = vector.extract_strided_slice %385 {offsets = [0, 0], sizes = [16, 16], strides = [1, 1]} : vector<16x22xf32> to vector<16x16xf32>
    %387 = vector.broadcast %77 : f32 to vector<16x16xf32>
    %388 = arith.mulf %387, %386 : vector<16x16xf32>
    %389 = arith.addf %383, %388 : vector<16x16xf32>
    %390 = vector.extract_strided_slice %385 {offsets = [0, 1], sizes = [16, 16], strides = [1, 1]} : vector<16x22xf32> to vector<16x16xf32>
    %391 = vector.broadcast %78 : f32 to vector<16x16xf32>
    %392 = arith.mulf %391, %390 : vector<16x16xf32>
    %393 = arith.addf %389, %392 : vector<16x16xf32>
    %394 = vector.extract_strided_slice %385 {offsets = [0, 2], sizes = [16, 16], strides = [1, 1]} : vector<16x22xf32> to vector<16x16xf32>
    %395 = vector.broadcast %79 : f32 to vector<16x16xf32>
    %396 = arith.mulf %395, %394 : vector<16x16xf32>
    %397 = arith.addf %393, %396 : vector<16x16xf32>
    %398 = vector.extract_strided_slice %385 {offsets = [0, 3], sizes = [16, 16], strides = [1, 1]} : vector<16x22xf32> to vector<16x16xf32>
    %399 = vector.broadcast %80 : f32 to vector<16x16xf32>
    %400 = arith.mulf %399, %398 : vector<16x16xf32>
    %401 = arith.addf %397, %400 : vector<16x16xf32>
    %402 = vector.extract_strided_slice %385 {offsets = [0, 4], sizes = [16, 16], strides = [1, 1]} : vector<16x22xf32> to vector<16x16xf32>
    %403 = vector.broadcast %81 : f32 to vector<16x16xf32>
    %404 = arith.mulf %403, %402 : vector<16x16xf32>
    %405 = arith.addf %401, %404 : vector<16x16xf32>
    %406 = vector.extract_strided_slice %385 {offsets = [0, 5], sizes = [16, 16], strides = [1, 1]} : vector<16x22xf32> to vector<16x16xf32>
    %407 = vector.broadcast %82 : f32 to vector<16x16xf32>
    %408 = arith.mulf %407, %406 : vector<16x16xf32>
    %409 = arith.addf %405, %408 : vector<16x16xf32>
    %410 = vector.extract_strided_slice %385 {offsets = [0, 6], sizes = [16, 16], strides = [1, 1]} : vector<16x22xf32> to vector<16x16xf32>
    %411 = vector.broadcast %83 : f32 to vector<16x16xf32>
    %412 = arith.mulf %411, %410 : vector<16x16xf32>
    %413 = arith.addf %409, %412 : vector<16x16xf32>
    %c1_47 = arith.constant 1 : index
    %c3_48 = arith.constant 3 : index
    %c0_49 = arith.constant 0 : index
    %414 = vector.load %arg4[%c1_47, %c3_48, %c0_49] : memref<2x22x22xf32, #tpu.memory_space<vmem>>, vector<1x16x22xf32>
    %415 = vector.shape_cast %414 : vector<1x16x22xf32> to vector<16x22xf32>
    %416 = vector.extract_strided_slice %415 {offsets = [0, 0], sizes = [16, 16], strides = [1, 1]} : vector<16x22xf32> to vector<16x16xf32>
    %417 = vector.broadcast %84 : f32 to vector<16x16xf32>
    %418 = arith.mulf %417, %416 : vector<16x16xf32>
    %419 = arith.addf %413, %418 : vector<16x16xf32>
    %420 = vector.extract_strided_slice %415 {offsets = [0, 1], sizes = [16, 16], strides = [1, 1]} : vector<16x22xf32> to vector<16x16xf32>
    %421 = vector.broadcast %85 : f32 to vector<16x16xf32>
    %422 = arith.mulf %421, %420 : vector<16x16xf32>
    %423 = arith.addf %419, %422 : vector<16x16xf32>
    %424 = vector.extract_strided_slice %415 {offsets = [0, 2], sizes = [16, 16], strides = [1, 1]} : vector<16x22xf32> to vector<16x16xf32>
    %425 = vector.broadcast %86 : f32 to vector<16x16xf32>
    %426 = arith.mulf %425, %424 : vector<16x16xf32>
    %427 = arith.addf %423, %426 : vector<16x16xf32>
    %428 = vector.extract_strided_slice %415 {offsets = [0, 3], sizes = [16, 16], strides = [1, 1]} : vector<16x22xf32> to vector<16x16xf32>
    %429 = vector.broadcast %87 : f32 to vector<16x16xf32>
    %430 = arith.mulf %429, %428 : vector<16x16xf32>
    %431 = arith.addf %427, %430 : vector<16x16xf32>
    %432 = vector.extract_strided_slice %415 {offsets = [0, 4], sizes = [16, 16], strides = [1, 1]} : vector<16x22xf32> to vector<16x16xf32>
    %433 = vector.broadcast %88 : f32 to vector<16x16xf32>
    %434 = arith.mulf %433, %432 : vector<16x16xf32>
    %435 = arith.addf %431, %434 : vector<16x16xf32>
    %436 = vector.extract_strided_slice %415 {offsets = [0, 5], sizes = [16, 16], strides = [1, 1]} : vector<16x22xf32> to vector<16x16xf32>
    %437 = vector.broadcast %89 : f32 to vector<16x16xf32>
    %438 = arith.mulf %437, %436 : vector<16x16xf32>
    %439 = arith.addf %435, %438 : vector<16x16xf32>
    %440 = vector.extract_strided_slice %415 {offsets = [0, 6], sizes = [16, 16], strides = [1, 1]} : vector<16x22xf32> to vector<16x16xf32>
    %441 = vector.broadcast %90 : f32 to vector<16x16xf32>
    %442 = arith.mulf %441, %440 : vector<16x16xf32>
    %443 = arith.addf %439, %442 : vector<16x16xf32>
    %c1_50 = arith.constant 1 : index
    %c4_51 = arith.constant 4 : index
    %c0_52 = arith.constant 0 : index
    %444 = vector.load %arg4[%c1_50, %c4_51, %c0_52] : memref<2x22x22xf32, #tpu.memory_space<vmem>>, vector<1x16x22xf32>
    %445 = vector.shape_cast %444 : vector<1x16x22xf32> to vector<16x22xf32>
    %446 = vector.extract_strided_slice %445 {offsets = [0, 0], sizes = [16, 16], strides = [1, 1]} : vector<16x22xf32> to vector<16x16xf32>
    %447 = vector.broadcast %91 : f32 to vector<16x16xf32>
    %448 = arith.mulf %447, %446 : vector<16x16xf32>
    %449 = arith.addf %443, %448 : vector<16x16xf32>
    %450 = vector.extract_strided_slice %445 {offsets = [0, 1], sizes = [16, 16], strides = [1, 1]} : vector<16x22xf32> to vector<16x16xf32>
    %451 = vector.broadcast %92 : f32 to vector<16x16xf32>
    %452 = arith.mulf %451, %450 : vector<16x16xf32>
    %453 = arith.addf %449, %452 : vector<16x16xf32>
    %454 = vector.extract_strided_slice %445 {offsets = [0, 2], sizes = [16, 16], strides = [1, 1]} : vector<16x22xf32> to vector<16x16xf32>
    %455 = vector.broadcast %93 : f32 to vector<16x16xf32>
    %456 = arith.mulf %455, %454 : vector<16x16xf32>
    %457 = arith.addf %453, %456 : vector<16x16xf32>
    %458 = vector.extract_strided_slice %445 {offsets = [0, 3], sizes = [16, 16], strides = [1, 1]} : vector<16x22xf32> to vector<16x16xf32>
    %459 = vector.broadcast %94 : f32 to vector<16x16xf32>
    %460 = arith.mulf %459, %458 : vector<16x16xf32>
    %461 = arith.addf %457, %460 : vector<16x16xf32>
    %462 = vector.extract_strided_slice %445 {offsets = [0, 4], sizes = [16, 16], strides = [1, 1]} : vector<16x22xf32> to vector<16x16xf32>
    %463 = vector.broadcast %95 : f32 to vector<16x16xf32>
    %464 = arith.mulf %463, %462 : vector<16x16xf32>
    %465 = arith.addf %461, %464 : vector<16x16xf32>
    %466 = vector.extract_strided_slice %445 {offsets = [0, 5], sizes = [16, 16], strides = [1, 1]} : vector<16x22xf32> to vector<16x16xf32>
    %467 = vector.broadcast %96 : f32 to vector<16x16xf32>
    %468 = arith.mulf %467, %466 : vector<16x16xf32>
    %469 = arith.addf %465, %468 : vector<16x16xf32>
    %470 = vector.extract_strided_slice %445 {offsets = [0, 6], sizes = [16, 16], strides = [1, 1]} : vector<16x22xf32> to vector<16x16xf32>
    %471 = vector.broadcast %97 : f32 to vector<16x16xf32>
    %472 = arith.mulf %471, %470 : vector<16x16xf32>
    %473 = arith.addf %469, %472 : vector<16x16xf32>
    %c1_53 = arith.constant 1 : index
    %c5_54 = arith.constant 5 : index
    %c0_55 = arith.constant 0 : index
    %474 = vector.load %arg4[%c1_53, %c5_54, %c0_55] : memref<2x22x22xf32, #tpu.memory_space<vmem>>, vector<1x16x22xf32>
    %475 = vector.shape_cast %474 : vector<1x16x22xf32> to vector<16x22xf32>
    %476 = vector.extract_strided_slice %475 {offsets = [0, 0], sizes = [16, 16], strides = [1, 1]} : vector<16x22xf32> to vector<16x16xf32>
    %477 = vector.broadcast %98 : f32 to vector<16x16xf32>
    %478 = arith.mulf %477, %476 : vector<16x16xf32>
    %479 = arith.addf %473, %478 : vector<16x16xf32>
    %480 = vector.extract_strided_slice %475 {offsets = [0, 1], sizes = [16, 16], strides = [1, 1]} : vector<16x22xf32> to vector<16x16xf32>
    %481 = vector.broadcast %99 : f32 to vector<16x16xf32>
    %482 = arith.mulf %481, %480 : vector<16x16xf32>
    %483 = arith.addf %479, %482 : vector<16x16xf32>
    %484 = vector.extract_strided_slice %475 {offsets = [0, 2], sizes = [16, 16], strides = [1, 1]} : vector<16x22xf32> to vector<16x16xf32>
    %485 = vector.broadcast %100 : f32 to vector<16x16xf32>
    %486 = arith.mulf %485, %484 : vector<16x16xf32>
    %487 = arith.addf %483, %486 : vector<16x16xf32>
    %488 = vector.extract_strided_slice %475 {offsets = [0, 3], sizes = [16, 16], strides = [1, 1]} : vector<16x22xf32> to vector<16x16xf32>
    %489 = vector.broadcast %101 : f32 to vector<16x16xf32>
    %490 = arith.mulf %489, %488 : vector<16x16xf32>
    %491 = arith.addf %487, %490 : vector<16x16xf32>
    %492 = vector.extract_strided_slice %475 {offsets = [0, 4], sizes = [16, 16], strides = [1, 1]} : vector<16x22xf32> to vector<16x16xf32>
    %493 = vector.broadcast %102 : f32 to vector<16x16xf32>
    %494 = arith.mulf %493, %492 : vector<16x16xf32>
    %495 = arith.addf %491, %494 : vector<16x16xf32>
    %496 = vector.extract_strided_slice %475 {offsets = [0, 5], sizes = [16, 16], strides = [1, 1]} : vector<16x22xf32> to vector<16x16xf32>
    %497 = vector.broadcast %103 : f32 to vector<16x16xf32>
    %498 = arith.mulf %497, %496 : vector<16x16xf32>
    %499 = arith.addf %495, %498 : vector<16x16xf32>
    %500 = vector.extract_strided_slice %475 {offsets = [0, 6], sizes = [16, 16], strides = [1, 1]} : vector<16x22xf32> to vector<16x16xf32>
    %501 = vector.broadcast %104 : f32 to vector<16x16xf32>
    %502 = arith.mulf %501, %500 : vector<16x16xf32>
    %503 = arith.addf %499, %502 : vector<16x16xf32>
    %c1_56 = arith.constant 1 : index
    %c6_57 = arith.constant 6 : index
    %c0_58 = arith.constant 0 : index
    %504 = vector.load %arg4[%c1_56, %c6_57, %c0_58] : memref<2x22x22xf32, #tpu.memory_space<vmem>>, vector<1x16x22xf32>
    %505 = vector.shape_cast %504 : vector<1x16x22xf32> to vector<16x22xf32>
    %506 = vector.extract_strided_slice %505 {offsets = [0, 0], sizes = [16, 16], strides = [1, 1]} : vector<16x22xf32> to vector<16x16xf32>
    %507 = vector.broadcast %105 : f32 to vector<16x16xf32>
    %508 = arith.mulf %507, %506 : vector<16x16xf32>
    %509 = arith.addf %503, %508 : vector<16x16xf32>
    %510 = vector.extract_strided_slice %505 {offsets = [0, 1], sizes = [16, 16], strides = [1, 1]} : vector<16x22xf32> to vector<16x16xf32>
    %511 = vector.broadcast %106 : f32 to vector<16x16xf32>
    %512 = arith.mulf %511, %510 : vector<16x16xf32>
    %513 = arith.addf %509, %512 : vector<16x16xf32>
    %514 = vector.extract_strided_slice %505 {offsets = [0, 2], sizes = [16, 16], strides = [1, 1]} : vector<16x22xf32> to vector<16x16xf32>
    %515 = vector.broadcast %107 : f32 to vector<16x16xf32>
    %516 = arith.mulf %515, %514 : vector<16x16xf32>
    %517 = arith.addf %513, %516 : vector<16x16xf32>
    %518 = vector.extract_strided_slice %505 {offsets = [0, 3], sizes = [16, 16], strides = [1, 1]} : vector<16x22xf32> to vector<16x16xf32>
    %519 = vector.broadcast %108 : f32 to vector<16x16xf32>
    %520 = arith.mulf %519, %518 : vector<16x16xf32>
    %521 = arith.addf %517, %520 : vector<16x16xf32>
    %522 = vector.extract_strided_slice %505 {offsets = [0, 4], sizes = [16, 16], strides = [1, 1]} : vector<16x22xf32> to vector<16x16xf32>
    %523 = vector.broadcast %109 : f32 to vector<16x16xf32>
    %524 = arith.mulf %523, %522 : vector<16x16xf32>
    %525 = arith.addf %521, %524 : vector<16x16xf32>
    %526 = vector.extract_strided_slice %505 {offsets = [0, 5], sizes = [16, 16], strides = [1, 1]} : vector<16x22xf32> to vector<16x16xf32>
    %527 = vector.broadcast %110 : f32 to vector<16x16xf32>
    %528 = arith.mulf %527, %526 : vector<16x16xf32>
    %529 = arith.addf %525, %528 : vector<16x16xf32>
    %530 = vector.extract_strided_slice %505 {offsets = [0, 6], sizes = [16, 16], strides = [1, 1]} : vector<16x22xf32> to vector<16x16xf32>
    %531 = vector.broadcast %111 : f32 to vector<16x16xf32>
    %532 = arith.mulf %531, %530 : vector<16x16xf32>
    %533 = arith.addf %529, %532 : vector<16x16xf32>
    %534 = vector.broadcast %112 : f32 to vector<16x16xf32>
    %535 = arith.addf %533, %534 : vector<16x16xf32>
    %536 = arith.negf %535 : vector<16x16xf32>
    %537 = math.exp %536 : vector<16x16xf32>
    %cst_59 = arith.constant 1.000000e+00 : f32
    %538 = vector.broadcast %cst_59 : f32 to vector<16x16xf32>
    %539 = arith.addf %538, %537 : vector<16x16xf32>
    %540 = arith.divf %538, %539 : vector<16x16xf32>
    %c0_60 = arith.constant 0 : index
    %c0_61 = arith.constant 0 : index
    %c0_62 = arith.constant 0 : index
    %c0_63 = arith.constant 0 : index
    %541 = vector.load %arg2[%c0_60, %c0_61, %c0_62, %c0_63] : memref<1x4x16x16xf32, #tpu.memory_space<vmem>>, vector<1x4x16x16xf32>
    %542 = vector.shape_cast %541 : vector<1x4x16x16xf32> to vector<4x16x16xf32>
    %543 = vector.shape_cast %540 : vector<16x16xf32> to vector<1x16x16xf32>
    %544 = vector.broadcast %543 : vector<1x16x16xf32> to vector<4x16x16xf32>
    %545 = arith.mulf %542, %544 : vector<4x16x16xf32>
    %c0_64 = arith.constant 0 : index
    %c0_65 = arith.constant 0 : index
    %c0_66 = arith.constant 0 : index
    %c0_67 = arith.constant 0 : index
    %546 = vector.load %arg3[%c0_64, %c0_65, %c0_66, %c0_67] : memref<1x4x16x16xf32, #tpu.memory_space<vmem>>, vector<1x4x16x16xf32>
    %547 = vector.shape_cast %546 : vector<1x4x16x16xf32> to vector<4x16x16xf32>
    %548 = vector.shape_cast %545 : vector<4x16x16xf32> to vector<1x4x16x16xf32>
    tpu.vector_store %arg3[%c0_64, %c0_65, %c0_66, %c0_67], %548 {strides = array<i32>} : memref<1x4x16x16xf32, #tpu.memory_space<vmem>>, vector<1x4x16x16xf32>,
    return
  }
  func.func @transform_0(%arg0: i32) -> i32 {
    %c0_i32 = arith.constant 0 : i32
    %c0_i32_0 = arith.constant 0 : i32
    return %c0_i32 : i32
  }
  func.func @transform_1(%arg0: i32) -> (i32, i32, i32, i32) {
    %c0_i32 = arith.constant 0 : i32
    %c0_i32_0 = arith.constant 0 : i32
    %c0_i32_1 = arith.constant 0 : i32
    %c0_i32_2 = arith.constant 0 : i32
    return %arg0, %c0_i32, %c0_i32_0, %c0_i32_1 : i32, i32, i32, i32
  }
  func.func @transform_2(%arg0: i32) -> (i32, i32, i32, i32) {
    %c0_i32 = arith.constant 0 : i32
    %c0_i32_0 = arith.constant 0 : i32
    %c0_i32_1 = arith.constant 0 : i32
    %c0_i32_2 = arith.constant 0 : i32
    return %arg0, %c0_i32, %c0_i32_0, %c0_i32_1 : i32, i32, i32, i32
  }
}

</mosaic_0001>

<bundles_post_ra>
// kernel: spatial_gate.1
= control target key start
LH: loop header
LB: loop body
LE: loop exit
PB: predicated region body
PF: predicated region fallthrough
CT: control target
= control target key end

     0   :  { %7 = vsyncpa [#allocation6], 0  ;;  %s2866_s0 = inlined_call_operand.hbm [shape: f32[99], index: 0, kind: input, shape index: {}]   ;;  %s2867_s1 = inlined_call_operand.hbm [shape: f32[2,4,16,16], index: 1, kind: input, shape index: {}]   ;;  %s2868_s2 = inlined_call_operand.hbm [shape: f32[2,4,16,16], index: 2, kind: output, shape index: {}]  }
   0x1   :  { %8 = vsyncpa [#allocation4], 0 }
   0x2   :  { %10 = vsyncpa [#allocation4 + $0x1], 0 }
   0x3   :  { %11 = vsyncpa [#allocation5], 0 }
   0x4   :  { %13 = vsyncpa [#allocation5 + $0x1], 0  ;;  %s2010_s9 = smov 0   ;;  %s2012_s10 = smov 0  }
   0x5   :  { %s2014_s11 = smov 0   ;;  %s2016_s12 = smov 0  }
   0x6 LB: > { %s2031_s13 = sadd.s32 4294967295, %s1978_s12   ;;  %s1670_s14 = sadd.s32 4294967294, %s1978_s12   ;;  %s1978_s12 = sphi %s2016_s12, %s2888_s12   ;;  %s1974_s11 = sphi %s2014_s11, %s2887_s11   ;;  %s1970_s10 = sphi %s2012_s10, %s2886_s10   ;;  %s1966_s9 = sphi %s2010_s9, %s2885_s9  }
   0x7   : > { %s2035_s15 = sadd.s32 1, %s1978_s12   ;;  %s47_s16 = sadd.s32 1, %s1974_s11 }
   0x8   : > { %s44_s17 = ssub.s32 %s1978_s12, %s2035_s15  ;;  %p54_p0 = scmp.ne.s32.totalorder %s1974_s11, %s1970_s10 }
   0x9   : > { %p45_p1 = scmp.eq.s32.totalorder %s44_s17, 0  ;;  %p55_p2 = scmp.eq.s32.totalorder %s1978_s12, 0 }
   0xa   : > { %p60_p3 = scmp.ne.s32.totalorder %s1970_s10, %s1966_s9  ;;  %p2869_p4 = scmp.eq.s32.totalorder %s2031_s13, 0 }
   0xb   : > { %s2047_s18 = scalar_select %p45_p1, %s1974_s11, %s47_s16  }
   0xc   : > { %p2049_p5 = por %p55_p2, %p54_p0  ;;  %p2055_p6 = por %p2869_p4, %p60_p3 }
   0xd   : > { %p84_p7 = scmp.eq.s32.totalorder %s2031_s13, 1  ;;  %p90_p8 = scmp.eq.s32.totalorder %s1670_s14, 1 }
   0xe   : > { %s2873_s20 = scalar_select %p2055_p6, 1, 0 }
   0xf   : > { %p1671_p9 = scmp.ge.s32.totalorder %s1978_s12, 1  ;;  %p97_p10 = scmp.lt.s32.totalorder %s1978_s12, 3 }
  0x10   : > { %p2062_p11 = por %p84_p7, %p54_p0  ;;  %p2066_p12 = por %p90_p8, %p60_p3 }
  0x11   : > { %p2070_p13 = pnand %p1671_p9, %p97_p10  ;;  %p1809_p4 = scmp.lt.s32.totalorder %s1978_s12, 2 }
  0x12   : > { %s2874_s21 = scalar_select %p2062_p11, 1, 0 }
  0x13   : > { %s2875_s22 = scalar_select %p2066_p12, 1, 0 }
  0x14   : > { %p1796_p2 = pneg %p2070_p13  ;;  %s119_s24 = sand.u32 1, %s1974_s11  }
  0x15   : > { %s1786_s25 = sshll.u32 %s1978_s12, 10  ;;  %p2877_p6 = scmp.eq.s32.totalorder %s2031_s13, 0 }
  0x16   : > { %p2084_p7 = pnand %p1809_p4, %p2049_p5  ;;  %s1674_s27 = sshll.u32 %s119_s24, 6 }
  0x17   : > { %p1797_p0 = pnand %p1796_p2, %p2877_p6  ;;  %s1865_s30 = scalar_lea.hbm %s2866_s0, 16 }
  0x18   : > { %p1866_p3 = scmp.ne.s32.totalorder %s2866_s0, %s1865_s30  ;;  %p1872_p6 = scmp.lt.u32.totalorder %s1865_s30, %s2866_s0 }
  0x19   : > { %p1867_p8 = pneg %p1797_p0 }
  0x1b   : > { %p1868_p9 = pnand %p1867_p8, %p1866_p3 }
  0x1d   : > { %p1869_p10 = pneg %p1868_p9 }
  0x1f   : > { %p1874_p4 = pnand %p1872_p6, %p1869_p10 }
  0x21   : > { %1877 = shalt.err (!%p1874_p4)
}
  0x22   : > { %s1980_s7 = smov [#allocation3]   ;;  %s2103_s19 = scalar_lea.hbm %s2867_s1, %s1786_s25 }
  0x23   : > { %1799 = dma.hbm_to_smem (!%p1797_p0), %s2866_s0, 16, %s1980_s7, [#allocation6]  }
  0x24   : > { %s123_s28 = scalar_lea.vmem [#allocation7], %s1674_s27  ;;  %s2107_s30 = scalar_lea.sflag [#allocation4], %s119_s24 }
  0x25   : > { %s130_s29 = sshll.u32 %s123_s28, 4  ;;  %s1878_s3 = scalar_lea.hbm %s2103_s19, 1024  ;;  %s2105_s29 = int_to_ptr.vmem [resolvable:$true] %s130_s29 }
  0x26   : > { %p1879_p5 = scmp.ne.s32.totalorder %s2103_s19, %s1878_s3  ;;  %p1880_p2 = pneg %p2084_p7 }
  0x27   : > { %s1883_s5 = scalar_lea.hbm %s2867_s1, 2048  ;;  %p1884_p8 = scmp.lt.u32.totalorder %s2103_s19, %s2867_s1 }
  0x28   : > { %p1881_p0 = pnand %p1880_p2, %p1879_p5  ;;  %p1885_p9 = scmp.lt.u32.totalorder %s1883_s5, %s1878_s3 }
  0x29   : > { %p1887_p6 = scmp.lt.u32.totalorder %s1878_s3, %s2103_s19 }
  0x2a   : > { %p1882_p3 = pneg %p1881_p0  ;;  %p1886_p10 = por %p1885_p9, %p1884_p8 }
  0x2c   : > { %p1888_p4 = por %p1887_p6, %p1886_p10 }
  0x2e   : > { %p1889_p1 = pnand %p1888_p4, %p1882_p3 }
  0x30   : > { %1892 = shalt.err (!%p1889_p1)
}
  0x31   : > { %s1893_s24 = scalar_lea.vmem %s2105_s29, 1024  ;;  %s1981_s27 = smov [#allocation7]  }
  0x32   : > { %p1894_p5 = scmp.ne.s32.totalorder %s2105_s29, %s1893_s24  ;;  %s1898_s8 = sshll.u32 %s1981_s27, 4  ;;  %s1899_s8 = int_to_ptr.vmem [resolvable:$false] %s1898_s8 }
  0x33   : > { %s1900_s14 = scalar_lea.vmem %s1899_s8, 2048  ;;  %p1901_p11 = scmp.lt.s32.totalorder %s2105_s29, %s1899_s8 }
  0x34   : > { %p1896_p0 = pnand %p1894_p5, %p1880_p2  ;;  %p1902_p8 = scmp.lt.s32.totalorder %s1900_s14, %s1893_s24 }
  0x36   : > { %p1897_p12 = pneg %p1896_p0  ;;  %p1903_p9 = por %p1902_p8, %p1901_p11 }
  0x38   : > { %p1904_p10 = pnand %p1903_p9, %p1897_p12 }
  0x3a   : > { %1907 = shalt.err (!%p1904_p10)
}
  0x3b   : > { %s1982_s16 = smov 128   ;;  %s1983_s17 = smov 8  }
  0x3c   : > { %1803 = dma.hbm_to_vmem [thread:$0]  (!%p2084_p7), %s2103_s19, 1024, %s2105_s29, %s2107_s30, %s1982_s16, %s1982_s16, %s1983_s17  }
  0x3d   : > { %142 = sbr.rel (%p2070_p13) target bundleno = 706 (0x2c2), region = 28  ;;  %p2879_p1 = scmp.eq.s32.totalorder (!%p2070_p13), %s2031_s13, 0 }
  0x44   : > { %1953 = dma.done.wait (%p2879_p1), [#allocation6], 16   ;;  %p2880_p2 = pmov %p2879_p1 }
  0x45   : > { %s2142_s28 = sand.u32 1, %s1970_s10   ;;  %p2881_p11 = scmp.ne.s32.totalorder %s2873_s20, 0 }
  0x46   : > { %1955 = vsyncadd (%p2880_p2), [#allocation6], 4294967280  ;;  %s1679_s3 = sshll.u32 %s2142_s28, 6  ;;  %s149_s25 = scalar_lea.sflag [#allocation4], %s2142_s28 }
  0x47   : > { %s2148_s26 = scalar_lea.vmem [#allocation7], %s1679_s3 }
  0x48   : > { %1957 = dma.done.wait (%p2881_p11), %s149_s25, 1024  }
  0x49   : > { %1959 = vsyncadd (%p2881_p11), %s149_s25, 4294966272 }
  0x4a   : > { %157 = sfence }
  0x4b   : > { %v174_v0 = vld [vmem:[%s2148_s26] sm:$0xff]  ;;  %v176_v1 = vld [vmem:[%s2148_s26 + $0x10] sm:$0xff]  ;;  %vm182_vm0 = vcmask 130048   ;;  %vm213_vm1 = vcmask 179200   ;;  %v175_v8 = vld [vmem:[%s2148_s26 + $0x8] sm:$0xff]  ;;  %v1984_v26 = vmov 0.0  }
  0x4c   : > { %v178_v2 = vld [vmem:[%s2148_s26 + $0x20] sm:$0xff]  ;;  %v180_v3 = vld [vmem:[%s2148_s26 + $0x30] sm:$0xff]  ;;  %v183_v4 = vsel %vm182_vm0, %v174_v0, -inf  ;;  %v184_v5 = vsel %vm182_vm0, %v176_v1, -inf  ;;  %v197_v7 = vsel %vm182_vm0, %v174_v0, 0.0  ;;  %v198_v11 = vsel %vm182_vm0, %v176_v1, 0.0 }
  0x4d   : > { %v185_v6 = vsel %vm182_vm0, %v178_v2, -inf  ;;  %v187_v10 = vsel %vm182_vm0, %v180_v3, -inf  ;;  %v177_v12 = vld [vmem:[%s2148_s26 + $0x18] sm:$0xff]  ;;  %v179_v13 = vld [vmem:[%s2148_s26 + $0x28] sm:$0xff]  ;;  %v190_v15 = vsel %vm182_vm0, %v175_v8, -inf  ;;  %v204_v22 = vsel %vm182_vm0, %v175_v8, 0.0 }
  0x4e   : > { %v186_v9 = vmax.f32 %v183_v4, %v185_v6  ;;  %v181_v14 = vld [vmem:[%s2148_s26 + $0x38] sm:$0xff]  ;;  %v188_v16 = vmax.f32 %v184_v5, %v187_v10  ;;  %v191_v17 = vsel %vm182_vm0, %v177_v12, -inf  ;;  %v192_v18 = vsel %vm182_vm0, %v179_v13, -inf  ;;  %214 = vst.msk [vmem:[#allocation2] sm:$0xff] %vm213_vm1, %v1984_v26  ;;  %215 = vst.msk [vmem:[#allocation2 + $0x8] sm:$0xff] %vm213_vm1, %v1984_v26  ;;  %s1985_s20 = smov 3  }
  0x4f   : > { %v194_v19 = vsel %vm182_vm0, %v181_v14, -inf  ;;  %v193_v20 = vmax.f32 %v190_v15, %v192_v18  ;;  %v205_v23 = vsel %vm182_vm0, %v177_v12, 0.0  ;;  %v199_v25 = vadd.f32 %v198_v11, %v197_v7  ;;  %218 = vst.msk [vmem:[#allocation2 + $0x18] sm:$0xff] %vm213_vm1, %v1984_v26  ;;  %219 = vst.msk [vmem:[#allocation2 + $0x20] sm:$0xff] %vm213_vm1, %v1984_v26  ;;  %s1681_s23 = sld [smem:[#allocation3 + $0x1]]  ;;  %s1682_s19 = sld [smem:[#allocation3 + $0x2]] }
  0x50   : > { %v195_v21 = vmax.f32 %v191_v17, %v194_v19  ;;  %v189_v24 = vmax.f32 %v186_v9, %v188_v16  ;;  %v200_v27 = vsel %vm182_vm0, %v178_v2, 0.0  ;;  %v202_v28 = vsel %vm182_vm0, %v180_v3, 0.0  ;;  %s1683_s29 = sld [smem:[#allocation3 + $0x3]]  ;;  %s1684_s30 = sld [smem:[#allocation3 + $0x4]] }
  0x51   : > { %vm216_vm2 = vcmask 177152   ;;  %v201_v30 = vadd.f32 %v200_v27, %v199_v25  ;;  %v206_v31 = vadd.f32 %v205_v23, %v204_v22  ;;  %v207_v32 = vsel %vm182_vm0, %v179_v13, 0.0  ;;  %s1986_s4 = smov 127   ;;  %s1685_s5 = sld [smem:[#allocation3 + $0x5]] }
  0x52   : > { %223 = vrot.lane.b32.xlu0 %v189_v24, %s1985_s20  ;;  %v196_v29 = vmax.f32 %v193_v20, %v195_v21  ;;  %217 = vst.msk [vmem:[#allocation2 + $0x10] sm:$0x3f] %vm216_vm2, %v1984_v26  ;;  %220 = vst.msk [vmem:[#allocation2 + $0x28] sm:$0x3f] %vm216_vm2, %v1984_v26  ;;  %v209_v33 = vsel %vm182_vm0, %v181_v14, 0.0  ;;  %vm229_vm3 = vcmask 154648  }
  0x53   : > { %v203_v34 = vadd.f32 %v202_v28, %v201_v30  ;;  %v208_v35 = vadd.f32 %v207_v32, %v206_v31  ;;  %s1987_s6 = smov 126   ;;  %s1686_s7 = sld [smem:[#allocation3 + $0x6]] }
  0x54   : > { %s1988_s24 = smov 125   ;;  %s1688_s27 = sld [smem:[#allocation3 + $0x8]] }
  0x55   : > { %v211_v36 = vmul.f32 0.25, %v203_v34  ;;  %v210_v37 = vadd.f32 %v209_v33, %v208_v35  ;;  %v349_v41 = vstv %s1681_s23  ;;  %v362_v45 = vstv %s1682_s19  ;;  %s1989_s8 = smov 124   ;;  %s1689_s14 = sld [smem:[#allocation3 + $0x9]] }
  0x56   : > { %225 = vrot.lane.b32.xlu0 %v196_v29, %s1985_s20  ;;  %v375_v50 = vstv %s1683_s29  ;;  %v388_v53 = vstv %s1684_s30  ;;  %s1990_s16 = smov 123   ;;  %s1690_s17 = sld [smem:[#allocation3 + $0xa]] }
  0x57   : > { %234 = vrot.lane.b32.xlu1 %v211_v36, %s1985_s20  ;;  %v212_v38 = vmul.f32 0.25, %v210_v37  ;;  %v401_v56 = vstv %s1685_s5  ;;  %s1991_s25 = smov 122   ;;  %s1692_s23 = sld [smem:[#allocation3 + $0xc]] }
  0x58   : > { %s1693_s19 = sld [smem:[#allocation3 + $0xd]]  ;;  %s1695_s29 = sld [smem:[#allocation3 + $0xf]] }
  0x59   : > { %v414_v59 = vstv %s1686_s7  ;;  %s1696_s30 = sld [smem:[#allocation3 + $0x10]]  ;;  %s1697_s5 = sld [smem:[#allocation3 + $0x11]] }
  0x5a   : > { %v434_v63 = vstv %s1688_s27  ;;  %s1698_s7 = sld [smem:[#allocation3 + $0x12]]  ;;  %s1699_s27 = sld [smem:[#allocation3 + $0x13]] }
  0x5b   : > { %236 = vrot.lane.b32.xlu1 %v212_v38, %s1985_s20  ;;  %v447_v3 = vstv %s1689_s14  ;;  %s1691_s20 = sld [smem:[#allocation3 + $0xb]]  ;;  %s1700_s14 = sld [smem:[#allocation3 + $0x14]] }
  0x5c   : > { %v460_v6 = vstv %s1690_s17  ;;  %s1702_s17 = sld [smem:[#allocation3 + $0x16]]  ;;  %p2882_p13 = scmp.ne.s32.totalorder %s2874_s21, 0 }
  0x5d   : > { %v486_v12 = vstv %s1692_s23  ;;  %s1704_s23 = sld [smem:[#allocation3 + $0x18]] }
  0x5e   : > { %v499_v15 = vstv %s1693_s19  ;;  %v519_v19 = vstv %s1695_s29  ;;  %s1705_s19 = sld [smem:[#allocation3 + $0x19]]  ;;  %s1706_s29 = sld [smem:[#allocation3 + $0x1a]] }
  0x5f   : > { %v532_v23 = vstv %s1696_s30  ;;  %v545_v26 = vstv %s1697_s5  ;;  %s1707_s30 = sld [smem:[#allocation3 + $0x1b]]  ;;  %s1709_s5 = sld [smem:[#allocation3 + $0x1d]] }
  0x60   : > { %v558_v29 = vstv %s1698_s7  ;;  %v571_v32 = vstv %s1699_s27  ;;  %s1710_s7 = sld [smem:[#allocation3 + $0x1e]]  ;;  %s1711_s27 = sld [smem:[#allocation3 + $0x1f]] }
  0x61   : > { %v473_v9 = vstv %s1691_s20  ;;  %v584_v35 = vstv %s1700_s14  ;;  %s1703_s20 = sld [smem:[#allocation3 + $0x17]]  ;;  %s1712_s14 = sld [smem:[#allocation3 + $0x20]] }
  0xc4   : > { %v224_v39 = vpop.permute.xlu0 %223 }
  0xc5   : > { %230 = vst.msk [vmem:[#allocation2 + $0x3] sm:$0xff] %vm229_vm3, %v224_v39  ;;  %v604_v39 = vstv %s1702_s17  ;;  %s1713_s17 = sld [smem:[#allocation3 + $0x21]] }
  0xc8   : > { %v226_v40 = vpop.permute.xlu0 %225 }
  0xc9   : > { %231 = vst.msk [vmem:[#allocation2 + $0xb] sm:$0xff] %vm229_vm3, %v226_v40  ;;  %v235_v42 = vpop.permute.xlu1 %234 }
  0xca   : > { %241 = vst.msk [vmem:[#allocation2 + $0x1b] sm:$0xff] %vm229_vm3, %v235_v42 }
  0xcc   : > { %v2185_v43 = vld [vmem:[#allocation2] sm:$0xff] }
  0xcd   : > { %v350_v44 = vmul.f32 %v349_v41, %v2185_v43  ;;  %v237_v46 = vpop.permute.xlu1 %236  ;;  %v363_v48 = vmul.f32 %v362_v45, %v2185_v43  ;;  %v376_v51 = vmul.f32 %v375_v50, %v2185_v43  ;;  %v389_v54 = vmul.f32 %v388_v53, %v2185_v43  ;;  %v2210_v62 = vld [vmem:[#allocation2 + $0x1] sm:$0xff] }
  0xce   : > { %242 = vst.msk [vmem:[#allocation2 + $0x23] sm:$0xff] %vm229_vm3, %v237_v46  ;;  %v402_v57 = vmul.f32 %v401_v56, %v2185_v43  ;;  %v415_v60 = vmul.f32 %v414_v59, %v2185_v43  ;;  %v435_v0 = vmul.f32 %v434_v63, %v2210_v62  ;;  %v448_v4 = vmul.f32 %v447_v3, %v2210_v62  ;;  %v2238_v18 = vld [vmem:[#allocation2 + $0x2] sm:$0xff] }
  0xcf   : > { %354 = vrot.lane.b32.xlu0 %v350_v44, %s1986_s4  ;;  %v461_v7 = vmul.f32 %v460_v6, %v2210_v62  ;;  %v474_v10 = vmul.f32 %v473_v9, %v2210_v62  ;;  %v487_v13 = vmul.f32 %v486_v12, %v2210_v62  ;;  %v500_v16 = vmul.f32 %v499_v15, %v2210_v62  ;;  %v2266_v38 = vld [vmem:[#allocation2 + $0x3] sm:$0xff] }
  0xd0   : > { %v2190_v47 = vld [vmem:[#allocation2 + $0x8] sm:$0xff]  ;;  %v520_v20 = vmul.f32 %v519_v19, %v2238_v18  ;;  %v533_v24 = vmul.f32 %v532_v23, %v2238_v18  ;;  %v546_v27 = vmul.f32 %v545_v26, %v2238_v18  ;;  %v559_v30 = vmul.f32 %v558_v29, %v2238_v18 }
  0xd1   : > { %v351_v49 = vmul.f32 %v349_v41, %v2190_v47  ;;  %v364_v52 = vmul.f32 %v362_v45, %v2190_v47  ;;  %v377_v55 = vmul.f32 %v375_v50, %v2190_v47  ;;  %v390_v58 = vmul.f32 %v388_v53, %v2190_v47  ;;  %v2216_v2 = vld [vmem:[#allocation2 + $0x9] sm:$0xff] }
  0xd2   : > { %v403_v61 = vmul.f32 %v401_v56, %v2190_v47  ;;  %v416_v1 = vmul.f32 %v414_v59, %v2190_v47  ;;  %v436_v5 = vmul.f32 %v434_v63, %v2216_v2  ;;  %v449_v8 = vmul.f32 %v447_v3, %v2216_v2  ;;  %v2244_v22 = vld [vmem:[#allocation2 + $0xa] sm:$0xff] }
  0xd3   : > { %367 = vrot.lane.b32.xlu0 %v363_v48, %s1987_s6  ;;  %356 = vrot.lane.b32.xlu1 %v351_v49, %s1986_s4  ;;  %v462_v11 = vmul.f32 %v460_v6, %v2216_v2  ;;  %v475_v14 = vmul.f32 %v473_v9, %v2216_v2  ;;  %v488_v17 = vmul.f32 %v486_v12, %v2216_v2  ;;  %v2272_v42 = vld [vmem:[#allocation2 + $0xb] sm:$0xff]  ;;  %v617_v44 = vstv %s1703_s20  ;;  %s1714_s20 = sld [smem:[#allocation3 + $0x22]] }
  0xd4   : > { %v501_v21 = vmul.f32 %v499_v15, %v2216_v2  ;;  %v521_v25 = vmul.f32 %v519_v19, %v2244_v22  ;;  %v534_v28 = vmul.f32 %v532_v23, %v2244_v22  ;;  %v547_v31 = vmul.f32 %v545_v26, %v2244_v22 }
  0xd5   : > { %v572_v33 = vmul.f32 %v571_v32, %v2238_v18  ;;  %v560_v34 = vmul.f32 %v558_v29, %v2244_v22  ;;  %v585_v36 = vmul.f32 %v584_v35, %v2238_v18  ;;  %v573_v37 = vmul.f32 %v571_v32, %v2244_v22 }
  0xd6   : > { %v605_v40 = vmul.f32 %v604_v39, %v2266_v38  ;;  %v586_v41 = vmul.f32 %v584_v35, %v2244_v22  ;;  %v618_v45 = vmul.f32 %v617_v44, %v2266_v38  ;;  %v606_v46 = vmul.f32 %v604_v39, %v2272_v42 }
  0xd7   : > { %380 = vrot.lane.b32.xlu0 %v376_v51, %s1988_s24  ;;  %369 = vrot.lane.b32.xlu1 %v364_v52, %s1987_s6  ;;  %v630_v48 = vstv %s1704_s23  ;;  %v619_v50 = vmul.f32 %v617_v44, %v2272_v42  ;;  %v643_v51 = vstv %s1705_s19  ;;  %s2314_s23 = sld [smem:[#allocation3 + $0x24]]  ;;  %s2320_s19 = sld [smem:[#allocation3 + $0x25]] }
  0xd8   : > { %v631_v49 = vmul.f32 %v630_v48, %v2266_v38  ;;  %v644_v52 = vmul.f32 %v643_v51, %v2266_v38  ;;  %v632_v53 = vmul.f32 %v630_v48, %v2272_v42  ;;  %v645_v56 = vmul.f32 %v643_v51, %v2272_v42 }
  0xd9   : > { %v702_v3 = vstv %s1710_s7  ;;  %v715_v6 = vstv %s1711_s27  ;;  %v728_v9 = vstv %s1712_s14  ;;  %v741_v12 = vstv %s1713_s17  ;;  %s2349_s7 = sld [smem:[#allocation3 + $0x28]]  ;;  %s2351_s27 = sld [smem:[#allocation3 + $0x7]] }
  0xda   : > { %v754_v15 = vstv %s1714_s20  ;;  %s2359_s14 = sld [smem:[#allocation3 + $0x29]]  ;;  %s2366_s17 = sld [smem:[#allocation3 + $0x2b]] }
  0xdb   : > { %393 = vrot.lane.b32.xlu0 %v389_v54, %s1989_s8  ;;  %382 = vrot.lane.b32.xlu1 %v377_v55, %s1988_s24  ;;  %v656_v54 = vstv %s1706_s29  ;;  %s2322_s29 = sld [smem:[#allocation3]]  ;;  %s2375_s20 = sld [smem:[#allocation3 + $0x2c]] }
  0xdc   : > { %v657_v55 = vmul.f32 %v656_v54, %v2266_v38  ;;  %v658_v59 = vmul.f32 %v656_v54, %v2272_v42 }
  0xdf   : > { %406 = vrot.lane.b32.xlu0 %v402_v57, %s1990_s16  ;;  %395 = vrot.lane.b32.xlu1 %v390_v58, %s1989_s8  ;;  %v669_v57 = vstv %s1707_s30  ;;  %s2331_s30 = sld [smem:[#allocation3 + $0x26]]  ;;  %v826_v54 = vstv %s2349_s7  ;;  %s2417_s7 = sld [smem:[#allocation3 + $0x32]] }
  0xe0   : > { %v670_v58 = vmul.f32 %v669_v57, %v2266_v38 }
  0xe1   : > { %v344_v29 = vstv %s2322_s29  ;;  %s2401_s29 = sld [smem:[#allocation3 + $0x2f]] }
  0xe2   : > { %v346_v44 = vmul.f32 %v344_v29, %v2190_v47 }
  0xe3   : > { %419 = vrot.lane.b32.xlu0 %v415_v60, %s1991_s25  ;;  %408 = vrot.lane.b32.xlu1 %v403_v61, %s1990_s16  ;;  %v2294_v60 = vld [vmem:[#allocation2 + $0x4] sm:$0xff]  ;;  %v689_v61 = vstv %s1709_s5  ;;  %s2340_s5 = sld [smem:[#allocation3 + $0x27]] }
  0xe4   : > { %v690_v63 = vmul.f32 %v689_v61, %v2294_v60 }
  0xe5   : > { %v800_v35 = vstv %s2331_s30  ;;  %s2403_s30 = sld [smem:[#allocation3 + $0xe]] }
  0xe7   : > { %439 = vrot.lane.b32.xlu0 %v435_v0, %s1986_s4  ;;  %421 = vrot.lane.b32.xlu1 %v416_v1, %s1991_s25  ;;  %v671_v0 = vmul.f32 %v669_v57, %v2272_v42  ;;  %v2300_v1 = vld [vmem:[#allocation2 + $0xc] sm:$0xff] }
  0xe8   : > { %v743_v19 = vmul.f32 %v741_v12, %v2300_v1  ;;  %v756_v26 = vmul.f32 %v754_v15, %v2300_v1 }
  0xeb   : > { %452 = vrot.lane.b32.xlu0 %v448_v4, %s1987_s6  ;;  %441 = vrot.lane.b32.xlu1 %v436_v5, %s1986_s4  ;;  %v703_v4 = vmul.f32 %v702_v3, %v2294_v60  ;;  %v691_v5 = vmul.f32 %v689_v61, %v2300_v1 }
  0xef   : > { %465 = vrot.lane.b32.xlu0 %v461_v7, %s1988_s24  ;;  %454 = vrot.lane.b32.xlu1 %v449_v8, %s1987_s6  ;;  %v716_v7 = vmul.f32 %v715_v6, %v2294_v60  ;;  %v704_v8 = vmul.f32 %v702_v3, %v2300_v1 }
  0xf3   : > { %478 = vrot.lane.b32.xlu0 %v474_v10, %s1989_s8  ;;  %467 = vrot.lane.b32.xlu1 %v462_v11, %s1988_s24  ;;  %v729_v10 = vmul.f32 %v728_v9, %v2294_v60  ;;  %v717_v11 = vmul.f32 %v715_v6, %v2300_v1 }
  0xf7   : > { %491 = vrot.lane.b32.xlu0 %v487_v13, %s1990_s16  ;;  %480 = vrot.lane.b32.xlu1 %v475_v14, %s1989_s8  ;;  %v742_v13 = vmul.f32 %v741_v12, %v2294_v60  ;;  %v730_v14 = vmul.f32 %v728_v9, %v2300_v1  ;;  %v2382_v12 = vld [vmem:[#allocation2 + $0x6] sm:$0xff] }
  0xfb   : > { %504 = vrot.lane.b32.xlu0 %v500_v16, %s1991_s25  ;;  %493 = vrot.lane.b32.xlu1 %v488_v17, %s1990_s16  ;;  %v755_v17 = vmul.f32 %v754_v15, %v2294_v60 }
  0xff   : > { %524 = vrot.lane.b32.xlu0 %v520_v20, %s1986_s4  ;;  %506 = vrot.lane.b32.xlu1 %v501_v21, %s1991_s25  ;;  %v2328_v20 = vld [vmem:[#allocation2 + $0x5] sm:$0xff]  ;;  %v774_v21 = vstv %s2314_s23  ;;  %s2385_s23 = sld [smem:[#allocation3 + $0x2d]] }
 0x100   : > { %v827_v61 = vmul.f32 %v826_v54, %v2328_v20 }
 0x103   : > { %537 = vrot.lane.b32.xlu0 %v533_v24, %s1987_s6  ;;  %526 = vrot.lane.b32.xlu1 %v521_v25, %s1986_s4  ;;  %v775_v25 = vmul.f32 %v774_v21, %v2328_v20 }
 0x107   : > { %550 = vrot.lane.b32.xlu0 %v546_v27, %s1988_s24  ;;  %539 = vrot.lane.b32.xlu1 %v534_v28, %s1987_s6  ;;  %v2337_v27 = vld [vmem:[#allocation2 + $0xd] sm:$0xff]  ;;  %v787_v28 = vstv %s2320_s19  ;;  %s2394_s19 = sld [smem:[#allocation3 + $0x2e]] }
 0x108   : > { %v788_v32 = vmul.f32 %v787_v28, %v2328_v20 }
 0x10b   : > { %563 = vrot.lane.b32.xlu0 %v559_v30, %s1989_s8  ;;  %552 = vrot.lane.b32.xlu1 %v547_v31, %s1988_s24 }
 0x10f   : > { %576 = vrot.lane.b32.xlu0 %v572_v33, %s1990_s16  ;;  %565 = vrot.lane.b32.xlu1 %v560_v34, %s1989_s8  ;;  %v776_v33 = vmul.f32 %v774_v21, %v2337_v27  ;;  %v345_v34 = vmul.f32 %v344_v29, %v2185_v43  ;;  %v885_v29 = vstv %s2385_s23  ;;  %s2454_s23 = sld [smem:[#allocation3 + $0x15]] }
 0x113   : > { %589 = vrot.lane.b32.xlu0 %v585_v36, %s1991_s25  ;;  %578 = vrot.lane.b32.xlu1 %v573_v37, %s1990_s16 }
 0x117   : > { %609 = vrot.lane.b32.xlu0 %v605_v40, %s1986_s4  ;;  %591 = vrot.lane.b32.xlu1 %v586_v41, %s1991_s25  ;;  %v801_v40 = vmul.f32 %v800_v35, %v2328_v20  ;;  %v789_v41 = vmul.f32 %v787_v28, %v2337_v27 }
 0x11b   : > { %622 = vrot.lane.b32.xlu0 %v618_v45, %s1987_s6  ;;  %611 = vrot.lane.b32.xlu1 %v606_v46, %s1986_s4  ;;  %v813_v45 = vstv %s2340_s5  ;;  %s2410_s5 = sld [smem:[#allocation3 + $0x30]] }
 0x11c   : > { %v814_v51 = vmul.f32 %v813_v45, %v2328_v20 }
 0x11f   : > { %635 = vrot.lane.b32.xlu0 %v631_v49, %s1988_s24  ;;  %624 = vrot.lane.b32.xlu1 %v619_v50, %s1987_s6 }
 0x123   : > { %648 = vrot.lane.b32.xlu0 %v644_v52, %s1989_s8  ;;  %637 = vrot.lane.b32.xlu1 %v632_v53, %s1988_s24  ;;  %v802_v52 = vmul.f32 %v800_v35, %v2337_v27 }
 0x127   : > { %661 = vrot.lane.b32.xlu0 %v657_v55, %s1990_s16  ;;  %650 = vrot.lane.b32.xlu1 %v645_v56, %s1989_s8  ;;  %v429_v55 = vstv %s2351_s27  ;;  %s2426_s27 = sld [smem:[#allocation3 + $0x33]] }
 0x12b   : > { %674 = vrot.lane.b32.xlu0 %v670_v58, %s1991_s25  ;;  %663 = vrot.lane.b32.xlu1 %v658_v59, %s1990_s16 }
 0x12f   : > { %694 = vrot.lane.b32.xlu0 %v690_v63, %s1986_s4  ;;  %676 = vrot.lane.b32.xlu1 %v671_v0, %s1991_s25  ;;  %v815_v63 = vmul.f32 %v813_v45, %v2337_v27  ;;  %v430_v0 = vmul.f32 %v429_v55, %v2210_v62  ;;  %v431_v62 = vmul.f32 %v429_v55, %v2216_v2  ;;  %v872_v2 = vstv %s2375_s20  ;;  %s2452_s20 = sld [smem:[#allocation3 + $0x36]] }
 0x133   : > { %707 = vrot.lane.b32.xlu0 %v703_v4, %s1987_s6  ;;  %696 = vrot.lane.b32.xlu1 %v691_v5, %s1986_s4  ;;  %v839_v5 = vstv %s2359_s14  ;;  %s2436_s14 = sld [smem:[#allocation3 + $0x34]] }
 0x134   : > { %v841_v21 = vmul.f32 %v839_v5, %v2337_v27 }
 0x137   : > { %720 = vrot.lane.b32.xlu0 %v716_v7, %s1988_s24  ;;  %709 = vrot.lane.b32.xlu1 %v704_v8, %s1987_s6 }
 0x13b   : > { %733 = vrot.lane.b32.xlu0 %v729_v10, %s1989_s8  ;;  %722 = vrot.lane.b32.xlu1 %v717_v11, %s1988_s24  ;;  %v840_v10 = vmul.f32 %v839_v5, %v2328_v20  ;;  %v828_v11 = vmul.f32 %v826_v54, %v2337_v27 }
 0x13f   : > { %746 = vrot.lane.b32.xlu0 %v742_v13, %s1990_s16  ;;  %735 = vrot.lane.b32.xlu1 %v730_v14, %s1989_s8  ;;  %v859_v14 = vstv %s2366_s17  ;;  %s2445_s17 = sld [smem:[#allocation3 + $0x35]] }
 0x141   : > { %v355_v16 = vpop.permute.xlu0 %354 }
 0x142   : > { %v360_v36 = vadd.f32 %v355_v16, %v345_v34 }
 0x143   : > { %759 = vrot.lane.b32.xlu0 %v755_v17, %s1991_s25  ;;  %748 = vrot.lane.b32.xlu1 %v743_v19, %s1990_s16  ;;  %v860_v19 = vmul.f32 %v859_v14, %v2382_v12 }
 0x145   : > { %v357_v23 = vpop.permute.xlu1 %356  ;;  %v368_v24 = vpop.permute.xlu0 %367 }
 0x146   : > { %v373_v43 = vadd.f32 %v368_v24, %v360_v36  ;;  %v361_v46 = vadd.f32 %v357_v23, %v346_v44  ;;  %v2391_v23 = vld [vmem:[#allocation2 + $0xe] sm:$0xff]  ;;  %v898_v36 = vstv %s2394_s19  ;;  %s2461_s19 = sld [smem:[#allocation3 + $0x37]] }
 0x147   : > { %779 = vrot.lane.b32.xlu0 %v775_v25, %s1986_s4  ;;  %761 = vrot.lane.b32.xlu1 %v756_v26, %s1991_s25  ;;  %v873_v26 = vmul.f32 %v872_v2, %v2382_v12  ;;  %v861_v28 = vmul.f32 %v859_v14, %v2391_v23  ;;  %v874_v34 = vmul.f32 %v872_v2, %v2391_v23 }
 0x148   : > { %v899_v44 = vmul.f32 %v898_v36, %v2382_v12  ;;  %v900_v54 = vmul.f32 %v898_v36, %v2391_v23 }
 0x149   : > { %v370_v30 = vpop.permute.xlu1 %369  ;;  %v381_v31 = vpop.permute.xlu0 %380 }
 0x14a   : > { %v386_v48 = vadd.f32 %v381_v31, %v373_v43  ;;  %v374_v53 = vadd.f32 %v370_v30, %v361_v46  ;;  %v887_v43 = vmul.f32 %v885_v29, %v2391_v23 }
 0x14b   : > { %792 = vrot.lane.b32.xlu0 %v788_v32, %s1987_s6  ;;  %781 = vrot.lane.b32.xlu1 %v776_v33, %s1986_s4  ;;  %v886_v33 = vmul.f32 %v885_v29, %v2382_v12  ;;  %v983_v29 = vstv %s2445_s17  ;;  %s2512_s17 = sld [smem:[#allocation3 + $0x3e]] }
 0x14d   : > { %v383_v37 = vpop.permute.xlu1 %382  ;;  %v394_v39 = vpop.permute.xlu0 %393 }
 0x14e   : > { %v399_v47 = vadd.f32 %v394_v39, %v386_v48  ;;  %v387_v56 = vadd.f32 %v383_v37, %v374_v53  ;;  %v911_v48 = vstv %s2401_s29  ;;  %s2468_s29 = sld [smem:[#allocation3 + $0x39]] }
 0x14f   : > { %805 = vrot.lane.b32.xlu0 %v801_v40, %s1988_s24  ;;  %794 = vrot.lane.b32.xlu1 %v789_v41, %s1987_s6 }
 0x151   : > { %v396_v49 = vpop.permute.xlu1 %395  ;;  %v407_v50 = vpop.permute.xlu0 %406 }
 0x152   : > { %v412_v57 = vadd.f32 %v407_v50, %v399_v47  ;;  %v400_v3 = vadd.f32 %v396_v49, %v387_v56  ;;  %v514_v49 = vstv %s2403_s30  ;;  %v912_v47 = vmul.f32 %v911_v48, %v2382_v12  ;;  %s2477_s30 = sld [smem:[#allocation3 + $0x3a]] }
 0x153   : > { %818 = vrot.lane.b32.xlu0 %v814_v51, %s1989_s8  ;;  %807 = vrot.lane.b32.xlu1 %v802_v52, %s1988_s24  ;;  %v515_v55 = vmul.f32 %v514_v49, %v2238_v18  ;;  %v516_v18 = vmul.f32 %v514_v49, %v2244_v22  ;;  %v2443_v22 = vld [vmem:[#allocation2 + $0x20] sm:$0xff] }
 0x155   : > { %v409_v58 = vpop.permute.xlu1 %408  ;;  %v420_v59 = vpop.permute.xlu0 %419 }
 0x156   : > { %v425_v4 = vadd.f32 %v420_v59, %v412_v57  ;;  %v413_v6 = vadd.f32 %v409_v58, %v400_v3  ;;  %v924_v58 = vstv %s2410_s5  ;;  %s2487_s5 = sld [smem:[#allocation3 + $0x3b]] }
 0x157   : > { %831 = vrot.lane.b32.xlu0 %v827_v61, %s1990_s16  ;;  %820 = vrot.lane.b32.xlu1 %v815_v63, %s1989_s8  ;;  %v925_v3 = vmul.f32 %v924_v58, %v2382_v12 }
 0x158   : > { %v432_v7 = vadd.f32 %v430_v0, %v425_v4  ;;  %v913_v4 = vmul.f32 %v911_v48, %v2391_v23  ;;  %v985_v48 = vmul.f32 %v983_v29, %v2443_v22 }
 0x159   : > { %v422_v8 = vpop.permute.xlu1 %421  ;;  %v440_v9 = vpop.permute.xlu0 %439 }
 0x15a   : > { %v426_v13 = vadd.f32 %v422_v8, %v413_v6  ;;  %v445_v30 = vadd.f32 %v440_v9, %v432_v7  ;;  %v2433_v6 = vld [vmem:[#allocation2 + $0x18] sm:$0xff]  ;;  %v944_v7 = vstv %s2417_s7  ;;  %s2496_s7 = sld [smem:[#allocation3 + $0x3c]] }
 0x15b   : > { %844 = vrot.lane.b32.xlu0 %v840_v10, %s1991_s25  ;;  %833 = vrot.lane.b32.xlu1 %v828_v11, %s1990_s16  ;;  %v945_v11 = vmul.f32 %v944_v7, %v2433_v6 }
 0x15c   : > { %v433_v15 = vadd.f32 %v431_v62, %v426_v13  ;;  %v926_v62 = vmul.f32 %v924_v58, %v2391_v23  ;;  %v957_v13 = vstv %s2426_s27  ;;  %s2503_s27 = sld [smem:[#allocation3 + $0x3d]] }
 0x15d   : > { %v442_v16 = vpop.permute.xlu1 %441  ;;  %v453_v17 = vpop.permute.xlu0 %452 }
 0x15e   : > { %v458_v35 = vadd.f32 %v453_v17, %v445_v30  ;;  %v446_v37 = vadd.f32 %v442_v16, %v433_v15  ;;  %v958_v16 = vmul.f32 %v957_v13, %v2433_v6  ;;  %v946_v17 = vmul.f32 %v944_v7, %v2443_v22 }
 0x15f   : > { %864 = vrot.lane.b32.xlu0 %v860_v19, %s1986_s4  ;;  %846 = vrot.lane.b32.xlu1 %v841_v21, %s1991_s25  ;;  %v970_v19 = vstv %s2436_s14  ;;  %s2505_s14 = sld [smem:[#allocation3 + $0x1c]] }
 0x161   : > { %v455_v24 = vpop.permute.xlu1 %454  ;;  %v466_v25 = vpop.permute.xlu0 %465 }
 0x162   : > { %v471_v39 = vadd.f32 %v466_v25, %v458_v35  ;;  %v459_v45 = vadd.f32 %v455_v24, %v446_v37  ;;  %v971_v25 = vmul.f32 %v970_v19, %v2433_v6  ;;  %v972_v35 = vmul.f32 %v970_v19, %v2443_v22 }
 0x163   : > { %877 = vrot.lane.b32.xlu0 %v873_v26, %s1987_s6  ;;  %866 = vrot.lane.b32.xlu1 %v861_v28, %s1986_s4  ;;  %v959_v26 = vmul.f32 %v957_v13, %v2443_v22  ;;  %v1068_v19 = vstv %s2496_s7  ;;  %s2563_s7 = sld [smem:[#allocation3 + $0x45]] }
 0x165   : > { %v468_v31 = vpop.permute.xlu1 %467  ;;  %v479_v32 = vpop.permute.xlu0 %478 }
 0x166   : > { %v484_v46 = vadd.f32 %v479_v32, %v471_v39  ;;  %v472_v50 = vadd.f32 %v468_v31, %v459_v45  ;;  %v996_v39 = vstv %s2452_s20  ;;  %s2519_s20 = sld [smem:[#allocation3 + $0x40]] }
 0x167   : > { %890 = vrot.lane.b32.xlu0 %v886_v33, %s1988_s24  ;;  %879 = vrot.lane.b32.xlu1 %v874_v34, %s1987_s6  ;;  %v984_v34 = vmul.f32 %v983_v29, %v2433_v6 }
 0x169   : > { %v481_v40 = vpop.permute.xlu1 %480  ;;  %v492_v41 = vpop.permute.xlu0 %491 }
 0x16a   : > { %v497_v51 = vadd.f32 %v492_v41, %v484_v46  ;;  %v485_v56 = vadd.f32 %v481_v40, %v472_v50  ;;  %v599_v40 = vstv %s2454_s23  ;;  %v997_v46 = vmul.f32 %v996_v39, %v2433_v6  ;;  %s2528_s23 = sld [smem:[#allocation3 + $0x41]] }
 0x16b   : > { %903 = vrot.lane.b32.xlu0 %v899_v44, %s1989_s8  ;;  %892 = vrot.lane.b32.xlu1 %v887_v43, %s1988_s24  ;;  %v600_v49 = vmul.f32 %v599_v40, %v2266_v38  ;;  %v601_v38 = vmul.f32 %v599_v40, %v2272_v42  ;;  %v1042_v42 = vstv %s2477_s30  ;;  %s2554_s30 = sld [smem:[#allocation3 + $0x44]] }
 0x16d   : > { %v494_v52 = vpop.permute.xlu1 %493  ;;  %v505_v53 = vpop.permute.xlu0 %504 }
 0x16e   : > { %v510_v57 = vadd.f32 %v505_v53, %v497_v51  ;;  %v498_v59 = vadd.f32 %v494_v52, %v485_v56  ;;  %v1009_v52 = vstv %s2461_s19  ;;  %s2538_s19 = sld [smem:[#allocation3 + $0x42]] }
 0x16f   : > { %916 = vrot.lane.b32.xlu0 %v912_v47, %s1990_s16  ;;  %905 = vrot.lane.b32.xlu1 %v900_v54, %s1989_s8  ;;  %v1010_v56 = vmul.f32 %v1009_v52, %v2433_v6 }
 0x170   : > { %v517_v61 = vadd.f32 %v515_v55, %v510_v57  ;;  %v998_v57 = vmul.f32 %v996_v39, %v2443_v22 }
 0x171   : > { %v507_v63 = vpop.permute.xlu1 %506  ;;  %v525_v0 = vpop.permute.xlu0 %524 }
 0x172   : > { %v511_v5 = vadd.f32 %v507_v63, %v498_v59  ;;  %v530_v21 = vadd.f32 %v525_v0, %v517_v61  ;;  %v2484_v59 = vld [vmem:[#allocation2 + $0x19] sm:$0xff]  ;;  %v1029_v61 = vstv %s2468_s29  ;;  %s2547_s29 = sld [smem:[#allocation3 + $0x43]] }
 0x173   : > { %929 = vrot.lane.b32.xlu0 %v925_v3, %s1991_s25  ;;  %918 = vrot.lane.b32.xlu1 %v913_v4, %s1990_s16  ;;  %v1030_v4 = vmul.f32 %v1029_v61, %v2484_v59 }
 0x174   : > { %v518_v8 = vadd.f32 %v516_v18, %v511_v5  ;;  %v1011_v18 = vmul.f32 %v1009_v52, %v2443_v22  ;;  %v2493_v5 = vld [vmem:[#allocation2 + $0x21] sm:$0xff] }
 0x175   : > { %v527_v9 = vpop.permute.xlu1 %526  ;;  %v538_v10 = vpop.permute.xlu0 %537 }
 0x176   : > { %v543_v28 = vadd.f32 %v538_v10, %v530_v21  ;;  %v531_v30 = vadd.f32 %v527_v9, %v518_v8  ;;  %v1031_v9 = vmul.f32 %v1029_v61, %v2493_v5  ;;  %v1043_v10 = vmul.f32 %v1042_v42, %v2484_v59 }
 0x177   : > { %949 = vrot.lane.b32.xlu0 %v945_v11, %s1986_s4  ;;  %931 = vrot.lane.b32.xlu1 %v926_v62, %s1991_s25  ;;  %v1055_v11 = vstv %s2487_s5  ;;  %s2556_s5 = sld [smem:[#allocation3 + $0x23]] }
 0x179   : > { %v540_v14 = vpop.permute.xlu1 %539  ;;  %v551_v15 = vpop.permute.xlu0 %550 }
 0x17a   : > { %v556_v31 = vadd.f32 %v551_v15, %v543_v28  ;;  %v544_v36 = vadd.f32 %v540_v14, %v531_v30  ;;  %v1044_v15 = vmul.f32 %v1042_v42, %v2493_v5  ;;  %v1069_v28 = vmul.f32 %v1068_v19, %v2484_v59 }
 0x17b   : > { %962 = vrot.lane.b32.xlu0 %v958_v16, %s1987_s6  ;;  %951 = vrot.lane.b32.xlu1 %v946_v17, %s1986_s4  ;;  %v1056_v16 = vmul.f32 %v1055_v11, %v2484_v59 }
 0x17d   : > { %v553_v2 = vpop.permute.xlu1 %552  ;;  %v564_v24 = vpop.permute.xlu0 %563 }
 0x17e   : > { %v569_v37 = vadd.f32 %v564_v24, %v556_v31  ;;  %v557_v41 = vadd.f32 %v553_v2, %v544_v36  ;;  %v1081_v31 = vstv %s2503_s27  ;;  %s2570_s27 = sld [smem:[#allocation3 + $0x47]] }
 0x17f   : > { %975 = vrot.lane.b32.xlu0 %v971_v25, %s1988_s24  ;;  %964 = vrot.lane.b32.xlu1 %v959_v26, %s1987_s6  ;;  %v1057_v26 = vmul.f32 %v1055_v11, %v2493_v5  ;;  %v1082_v39 = vmul.f32 %v1081_v31, %v2484_v59  ;;  %v1153_v11 = vstv %s2547_s29  ;;  %s2614_s29 = sld [smem:[#allocation3 + $0x4c]] }
 0x181   : > { %v566_v32 = vpop.permute.xlu1 %565  ;;  %v577_v33 = vpop.permute.xlu0 %576 }
 0x182   : > { %v582_v44 = vadd.f32 %v577_v33, %v569_v37  ;;  %v570_v50 = vadd.f32 %v566_v32, %v557_v41  ;;  %v684_v32 = vstv %s2505_s14  ;;  %v1070_v37 = vmul.f32 %v1068_v19, %v2493_v5  ;;  %s2579_s14 = sld [smem:[#allocation3 + $0x48]] }
 0x183   : > { %988 = vrot.lane.b32.xlu0 %v984_v34, %s1989_s8  ;;  %977 = vrot.lane.b32.xlu1 %v972_v35, %s1988_s24  ;;  %v685_v40 = vmul.f32 %v684_v32, %v2294_v60  ;;  %v686_v60 = vmul.f32 %v684_v32, %v2300_v1  ;;  %v1127_v1 = vstv %s2528_s23  ;;  %s2605_s23 = sld [smem:[#allocation3 + $0x4b]] }
 0x185   : > { %v579_v43 = vpop.permute.xlu1 %578  ;;  %v590_v45 = vpop.permute.xlu0 %589 }
 0x186   : > { %v595_v51 = vadd.f32 %v590_v45, %v582_v44  ;;  %v583_v53 = vadd.f32 %v579_v43, %v570_v50  ;;  %v1094_v43 = vstv %s2512_s17  ;;  %v1083_v50 = vmul.f32 %v1081_v31, %v2493_v5  ;;  %s2589_s17 = sld [smem:[#allocation3 + $0x49]] }
 0x187   : > { %1001 = vrot.lane.b32.xlu0 %v997_v46, %s1990_s16  ;;  %990 = vrot.lane.b32.xlu1 %v985_v48, %s1989_s8 }
 0x188   : > { %v602_v47 = vadd.f32 %v600_v49, %v595_v51  ;;  %v1095_v51 = vmul.f32 %v1094_v43, %v2484_v59 }
 0x189   : > { %v592_v54 = vpop.permute.xlu1 %591  ;;  %v610_v55 = vpop.permute.xlu0 %609 }
 0x18a   : > { %v596_v58 = vadd.f32 %v592_v54, %v583_v53  ;;  %v615_v62 = vadd.f32 %v610_v55, %v602_v47  ;;  %v2535_v53 = vld [vmem:[#allocation2 + $0x1a] sm:$0xff]  ;;  %v1114_v47 = vstv %s2519_s20  ;;  %s2598_s20 = sld [smem:[#allocation3 + $0x4a]] }
 0x18b   : > { %1014 = vrot.lane.b32.xlu0 %v1010_v56, %s1991_s25  ;;  %1003 = vrot.lane.b32.xlu1 %v998_v57, %s1990_s16  ;;  %v1096_v57 = vmul.f32 %v1094_v43, %v2493_v5 }
 0x18c   : > { %v603_v63 = vadd.f32 %v601_v38, %v596_v58  ;;  %v1115_v38 = vmul.f32 %v1114_v47, %v2535_v53  ;;  %v2544_v58 = vld [vmem:[#allocation2 + $0x22] sm:$0xff] }
 0x18d   : > { %v612_v0 = vpop.permute.xlu1 %611  ;;  %v623_v3 = vpop.permute.xlu0 %622 }
 0x18e   : > { %v628_v17 = vadd.f32 %v623_v3, %v615_v62  ;;  %v616_v21 = vadd.f32 %v612_v0, %v603_v63  ;;  %v1116_v0 = vmul.f32 %v1114_v47, %v2544_v58  ;;  %v1128_v3 = vmul.f32 %v1127_v1, %v2535_v53 }
 0x18f   : > { %1034 = vrot.lane.b32.xlu0 %v1030_v4, %s1986_s4  ;;  %1016 = vrot.lane.b32.xlu1 %v1011_v18, %s1991_s25  ;;  %v1140_v4 = vstv %s2538_s19  ;;  %s2607_s19 = sld [smem:[#allocation3 + $0x2a]] }
 0x191   : > { %v625_v7 = vpop.permute.xlu1 %624  ;;  %v636_v8 = vpop.permute.xlu0 %635 }
 0x192   : > { %v641_v2 = vadd.f32 %v636_v8, %v628_v17  ;;  %v629_v29 = vadd.f32 %v625_v7, %v616_v21  ;;  %v1129_v8 = vmul.f32 %v1127_v1, %v2544_v58  ;;  %v1154_v17 = vmul.f32 %v1153_v11, %v2535_v53 }
 0x193   : > { %1036 = vrot.lane.b32.xlu1 %v1031_v9, %s1986_s4  ;;  %1047 = vrot.lane.b32.xlu0 %v1043_v10, %s1987_s6  ;;  %v1141_v9 = vmul.f32 %v1140_v4, %v2535_v53 }
 0x195   : > { %v638_v13 = vpop.permute.xlu1 %637  ;;  %v649_v14 = vpop.permute.xlu0 %648 }
 0x196   : > { %v654_v30 = vadd.f32 %v649_v14, %v641_v2  ;;  %v642_v33 = vadd.f32 %v638_v13, %v629_v29  ;;  %v1166_v2 = vstv %s2554_s30  ;;  %s2621_s30 = sld [smem:[#allocation3 + $0x4e]] }
 0x197   : > { %1049 = vrot.lane.b32.xlu1 %v1044_v15, %s1987_s6  ;;  %1060 = vrot.lane.b32.xlu0 %v1056_v16, %s1988_s24  ;;  %v1142_v16 = vmul.f32 %v1140_v4, %v2544_v58  ;;  %v1167_v31 = vmul.f32 %v1166_v2, %v2535_v53  ;;  %v1238_v4 = vstv %s2598_s20  ;;  %s2665_s20 = sld [smem:[#allocation3 + $0x53]] }
 0x199   : > { %v651_v24 = vpop.permute.xlu1 %650  ;;  %v662_v25 = vpop.permute.xlu0 %661 }
 0x19a   : > { %v667_v34 = vadd.f32 %v662_v25, %v654_v30  ;;  %v655_v41 = vadd.f32 %v651_v24, %v642_v33  ;;  %v769_v24 = vstv %s2556_s5  ;;  %v1155_v30 = vmul.f32 %v1153_v11, %v2544_v58  ;;  %s2630_s5 = sld [smem:[#allocation3 + $0x4f]] }
 0x19b   : > { %1062 = vrot.lane.b32.xlu1 %v1057_v26, %s1988_s24  ;;  %1073 = vrot.lane.b32.xlu0 %v1069_v28, %s1989_s8  ;;  %v770_v32 = vmul.f32 %v769_v24, %v2328_v20  ;;  %v771_v20 = vmul.f32 %v769_v24, %v2337_v27  ;;  %v1212_v27 = vstv %s2579_s14  ;;  %s2656_s14 = sld [smem:[#allocation3 + $0x52]] }
 0x19d   : > { %v664_v35 = vpop.permute.xlu1 %663  ;;  %v675_v36 = vpop.permute.xlu0 %674 }
 0x19e   : > { %v680_v44 = vadd.f32 %v675_v36, %v667_v34  ;;  %v668_v45 = vadd.f32 %v664_v35, %v655_v41  ;;  %v1179_v35 = vstv %s2563_s7  ;;  %v1168_v41 = vmul.f32 %v1166_v2, %v2544_v58  ;;  %s2640_s7 = sld [smem:[#allocation3 + $0x50]] }
 0x19f   : > { %1075 = vrot.lane.b32.xlu1 %v1070_v37, %s1989_s8  ;;  %1086 = vrot.lane.b32.xlu0 %v1082_v39, %s1990_s16 }
 0x1a0   : > { %v687_v46 = vadd.f32 %v685_v40, %v680_v44  ;;  %v1180_v44 = vmul.f32 %v1179_v35, %v2535_v53 }
 0x1a1   : > { %v677_v48 = vpop.permute.xlu1 %676  ;;  %v695_v49 = vpop.permute.xlu0 %694 }
 0x1a2   : > { %v681_v52 = vadd.f32 %v677_v48, %v668_v45  ;;  %v700_v18 = vadd.f32 %v695_v49, %v687_v46  ;;  %v2586_v45 = vld [vmem:[#allocation2 + $0x1b] sm:$0xff]  ;;  %v1199_v46 = vstv %s2570_s27  ;;  %s2649_s27 = sld [smem:[#allocation3 + $0x51]] }
 0x1a3   : > { %1088 = vrot.lane.b32.xlu1 %v1083_v50, %s1990_s16  ;;  %1099 = vrot.lane.b32.xlu0 %v1095_v51, %s1991_s25  ;;  %v1181_v51 = vmul.f32 %v1179_v35, %v2544_v58 }
 0x1a4   : > { %v688_v54 = vadd.f32 %v686_v60, %v681_v52  ;;  %v1200_v60 = vmul.f32 %v1199_v46, %v2586_v45  ;;  %v2595_v52 = vld [vmem:[#allocation2 + $0x23] sm:$0xff] }
 0x1a5   : > { %v697_v55 = vpop.permute.xlu1 %696  ;;  %v708_v56 = vpop.permute.xlu0 %707 }
 0x1a6   : > { %v713_v10 = vadd.f32 %v708_v56, %v700_v18  ;;  %v701_v62 = vadd.f32 %v697_v55, %v688_v54  ;;  %v1201_v55 = vmul.f32 %v1199_v46, %v2595_v52  ;;  %v1213_v56 = vmul.f32 %v1212_v27, %v2586_v45 }
 0x1a7   : > { %1101 = vrot.lane.b32.xlu1 %v1096_v57, %s1991_s25  ;;  %1119 = vrot.lane.b32.xlu0 %v1115_v38, %s1986_s4  ;;  %v1225_v57 = vstv %s2589_s17  ;;  %s2660_s17 = sld [smem:[#allocation3 + $0x31]] }
 0x1a9   : > { %v710_v61 = vpop.permute.xlu1 %709  ;;  %v721_v63 = vpop.permute.xlu0 %720 }
 0x1aa   : > { %v726_v13 = vadd.f32 %v721_v63, %v713_v10  ;;  %v714_v19 = vadd.f32 %v710_v61, %v701_v62  ;;  %v1214_v63 = vmul.f32 %v1212_v27, %v2595_v52  ;;  %v1239_v10 = vmul.f32 %v1238_v4, %v2586_v45 }
 0x1ab   : > { %1121 = vrot.lane.b32.xlu1 %v1116_v0, %s1986_s4  ;;  %1132 = vrot.lane.b32.xlu0 %v1128_v3, %s1987_s6  ;;  %v1226_v0 = vmul.f32 %v1225_v57, %v2586_v45 }
 0x1ad   : > { %v723_v42 = vpop.permute.xlu1 %722  ;;  %v734_v7 = vpop.permute.xlu0 %733 }
 0x1ae   : > { %v739_v21 = vadd.f32 %v734_v7, %v726_v13  ;;  %v727_v25 = vadd.f32 %v723_v42, %v714_v19  ;;  %v1251_v13 = vstv %s2605_s23  ;;  %s2672_s23 = sld [smem:[#allocation3 + $0x55]] }
 0x1af   : > { %1134 = vrot.lane.b32.xlu1 %v1129_v8, %s1987_s6  ;;  %1145 = vrot.lane.b32.xlu0 %v1141_v9, %s1988_s24  ;;  %v1227_v9 = vmul.f32 %v1225_v57, %v2595_v52  ;;  %v1252_v2 = vmul.f32 %v1251_v13, %v2586_v45 }
 0x1b1   : > { %v736_v14 = vpop.permute.xlu1 %735  ;;  %v747_v15 = vpop.permute.xlu0 %746 }
 0x1b2   : > { %v752_v26 = vadd.f32 %v747_v15, %v739_v21  ;;  %v740_v33 = vadd.f32 %v736_v14, %v727_v25  ;;  %v854_v14 = vstv %s2607_s19  ;;  %v1240_v21 = vmul.f32 %v1238_v4, %v2595_v52  ;;  %s2681_s19 = sld [smem:[#allocation3 + $0x56]] }
 0x1b3   : > { %1147 = vrot.lane.b32.xlu1 %v1142_v16, %s1988_s24  ;;  %1158 = vrot.lane.b32.xlu0 %v1154_v17, %s1989_s8  ;;  %v855_v24 = vmul.f32 %v854_v14, %v2382_v12  ;;  %v856_v12 = vmul.f32 %v854_v14, %v2391_v23 }
 0x1b5   : > { %v749_v28 = vpop.permute.xlu1 %748  ;;  %v760_v29 = vpop.permute.xlu0 %759 }
 0x1b6   : > { %v765_v34 = vadd.f32 %v760_v29, %v752_v26  ;;  %v753_v36 = vadd.f32 %v749_v28, %v740_v33  ;;  %v1264_v28 = vstv %s2614_s29  ;;  %v1253_v33 = vmul.f32 %v1251_v13, %v2595_v52  ;;  %s2691_s29 = sld [smem:[#allocation3 + $0x57]] }
 0x1b7   : > { %1160 = vrot.lane.b32.xlu1 %v1155_v30, %s1989_s8  ;;  %1171 = vrot.lane.b32.xlu0 %v1167_v31, %s1990_s16 }
 0x1b8   : > { %v772_v37 = vadd.f32 %v770_v32, %v765_v34  ;;  %v1265_v34 = vmul.f32 %v1264_v28, %v2586_v45 }
 0x1b9   : > { %v762_v39 = vpop.permute.xlu1 %761  ;;  %v780_v40 = vpop.permute.xlu0 %779 }
 0x1ba   : > { %v766_v43 = vadd.f32 %v762_v39, %v753_v36  ;;  %v785_v38 = vadd.f32 %v780_v40, %v772_v37  ;;  %v2637_v37 = vld [vmem:[#allocation2 + $0x1c] sm:$0xff]  ;;  %v1284_v39 = vstv %s2621_s30  ;;  %s2700_s30 = sld [smem:[#allocation3 + $0x58]] }
 0x1bb   : > { %1173 = vrot.lane.b32.xlu1 %v1168_v41, %s1990_s16  ;;  %1184 = vrot.lane.b32.xlu0 %v1180_v44, %s1991_s25  ;;  %v1285_v23 = vmul.f32 %v1284_v39, %v2637_v37 }
 0x1bc   : > { %v773_v48 = vadd.f32 %v771_v20, %v766_v43  ;;  %v1266_v20 = vmul.f32 %v1264_v28, %v2595_v52 }
 0x1bd   : > { %v782_v49 = vpop.permute.xlu1 %781  ;;  %v793_v50 = vpop.permute.xlu0 %792 }
 0x1be   : > { %v798_v3 = vadd.f32 %v793_v50, %v785_v38  ;;  %v786_v18 = vadd.f32 %v782_v49, %v773_v48  ;;  %v2646_v48 = vld [vmem:[#allocation2 + $0x24] sm:$0xff]  ;;  %v1297_v49 = vstv %s2630_s5  ;;  %s2707_s5 = sld [smem:[#allocation3 + $0x59]] }
 0x1bf   : > { %1186 = vrot.lane.b32.xlu1 %v1181_v51, %s1991_s25  ;;  %1204 = vrot.lane.b32.xlu0 %v1200_v60, %s1986_s4  ;;  %v1286_v60 = vmul.f32 %v1284_v39, %v2646_v48  ;;  %v1298_v27 = vmul.f32 %v1297_v49, %v2637_v37  ;;  %v1299_v38 = vmul.f32 %v1297_v49, %v2646_v48  ;;  %v2697_v39 = vld [vmem:[#allocation2 + $0x25] sm:$0xff]  ;;  %v1395_v49 = vstv %s2691_s29  ;;  %s2762_s29 = sld [smem:[#allocation3 + $0x3f]] }
 0x1c1   : > { %v795_v47 = vpop.permute.xlu1 %794  ;;  %v806_v54 = vpop.permute.xlu0 %805 }
 0x1c2   : > { %v811_v42 = vadd.f32 %v806_v54, %v798_v3  ;;  %v799_v11 = vadd.f32 %v795_v47, %v786_v18 }
 0x1c3   : > { %1206 = vrot.lane.b32.xlu1 %v1201_v55, %s1986_s4  ;;  %1217 = vrot.lane.b32.xlu0 %v1213_v56, %s1987_s6  ;;  %v1310_v55 = vstv %s2640_s7  ;;  %s2711_s7 = sld [smem:[#allocation3 + $0x38]] }
 0x1c4   : > { %v1312_v18 = vmul.f32 %v1310_v55, %v2646_v48 }
 0x1c5   : > { %v808_v1 = vpop.permute.xlu1 %807  ;;  %v819_v61 = vpop.permute.xlu0 %818 }
 0x1c6   : > { %v824_v62 = vadd.f32 %v819_v61, %v811_v42  ;;  %v812_v15 = vadd.f32 %v808_v1, %v799_v11  ;;  %v1311_v1 = vmul.f32 %v1310_v55, %v2637_v37  ;;  %v1408_v55 = vstv %s2700_s30  ;;  %s2767_s30 = sld [smem:[#allocation3 + $0x61]] }
 0x1c7   : > { %1219 = vrot.lane.b32.xlu1 %v1214_v63, %s1987_s6  ;;  %1230 = vrot.lane.b32.xlu0 %v1226_v0, %s1988_s24  ;;  %v1323_v0 = vstv %s2649_s27  ;;  %s2716_s27 = sld [smem:[#allocation3 + $0x5a]] }
 0x1c8   : > { %v1324_v42 = vmul.f32 %v1323_v0, %v2637_v37  ;;  %v1325_v13 = vmul.f32 %v1323_v0, %v2646_v48 }
 0x1c9   : > { %v821_v7 = vpop.permute.xlu1 %820  ;;  %v832_v8 = vpop.permute.xlu0 %831  ;;  %v1024_v0 = vstv %s2711_s7 }
 0x1ca   : > { %v837_v16 = vadd.f32 %v832_v8, %v824_v62  ;;  %v825_v25 = vadd.f32 %v821_v7, %v812_v15 }
 0x1cb   : > { %1232 = vrot.lane.b32.xlu1 %v1227_v9, %s1988_s24  ;;  %1243 = vrot.lane.b32.xlu0 %v1239_v10, %s1989_s8  ;;  %v1336_v9 = vstv %s2656_s14  ;;  %v939_v10 = vstv %s2660_s17  ;;  %s2723_s14 = sld [smem:[#allocation3 + $0x5c]]  ;;  %s2732_s17 = sld [smem:[#allocation3 + $0x5d]] }
 0x1cc   : > { %v1337_v14 = vmul.f32 %v1336_v9, %v2637_v37  ;;  %v941_v28 = vmul.f32 %v939_v10, %v2443_v22 }
 0x1cd   : > { %v834_v17 = vpop.permute.xlu1 %833  ;;  %v845_v19 = vpop.permute.xlu0 %844 }
 0x1ce   : > { %v850_v26 = vadd.f32 %v845_v19, %v837_v16  ;;  %v838_v29 = vadd.f32 %v834_v17, %v825_v25  ;;  %v940_v16 = vmul.f32 %v939_v10, %v2433_v6  ;;  %v1349_v19 = vstv %s2665_s20  ;;  %s2742_s20 = sld [smem:[#allocation3 + $0x5e]] }
 0x1cf   : > { %1245 = vrot.lane.b32.xlu1 %v1240_v21, %s1989_s8  ;;  %1256 = vrot.lane.b32.xlu0 %v1252_v2, %s1990_s16  ;;  %v1338_v25 = vmul.f32 %v1336_v9, %v2646_v48  ;;  %v1434_v10 = vstv %s2716_s27 }
 0x1d0   : > { %v857_v30 = vadd.f32 %v855_v24, %v850_v26  ;;  %v1350_v26 = vmul.f32 %v1349_v19, %v2637_v37 }
 0x1d1   : > { %v847_v31 = vpop.permute.xlu1 %846  ;;  %v865_v32 = vpop.permute.xlu0 %864 }
 0x1d2   : > { %v851_v35 = vadd.f32 %v847_v31, %v838_v29  ;;  %v870_v36 = vadd.f32 %v865_v32, %v857_v30  ;;  %v2688_v30 = vld [vmem:[#allocation2 + $0x1d] sm:$0xff]  ;;  %v1369_v31 = vstv %s2672_s23  ;;  %s2751_s23 = sld [smem:[#allocation3 + $0x5f]] }
 0x1d3   : > { %1258 = vrot.lane.b32.xlu1 %v1253_v33, %s1990_s16  ;;  %1269 = vrot.lane.b32.xlu0 %v1265_v34, %s1991_s25  ;;  %v1370_v22 = vmul.f32 %v1369_v31, %v2688_v30 }
 0x1d4   : > { %v858_v40 = vadd.f32 %v856_v12, %v851_v35  ;;  %v1351_v12 = vmul.f32 %v1349_v19, %v2646_v48  ;;  %v2739_v19 = vld [vmem:[#allocation2 + $0x1e] sm:$0xff] }
 0x1d5   : > { %v867_v41 = vpop.permute.xlu1 %866  ;;  %v878_v44 = vpop.permute.xlu0 %877 }
 0x1d6   : > { %v871_v43 = vadd.f32 %v867_v41, %v858_v40  ;;  %v883_v46 = vadd.f32 %v878_v44, %v870_v36  ;;  %v1382_v40 = vstv %s2681_s19  ;;  %s2758_s19 = sld [smem:[#allocation3 + $0x60]] }
 0x1d7   : > { %1271 = vrot.lane.b32.xlu1 %v1266_v20, %s1991_s25  ;;  %1289 = vrot.lane.b32.xlu0 %v1285_v23, %s1986_s4  ;;  %v1371_v20 = vmul.f32 %v1369_v31, %v2697_v39  ;;  %v1383_v23 = vmul.f32 %v1382_v40, %v2688_v30 }
 0x1d9   : > { %v880_v50 = vpop.permute.xlu1 %879  ;;  %v891_v51 = vpop.permute.xlu0 %890 }
 0x1da   : > { %v884_v47 = vadd.f32 %v880_v50, %v871_v43  ;;  %v896_v54 = vadd.f32 %v891_v51, %v883_v46 }
 0x1db   : > { %1291 = vrot.lane.b32.xlu1 %v1286_v60, %s1986_s4  ;;  %1302 = vrot.lane.b32.xlu0 %v1298_v27, %s1987_s6  ;;  %v1384_v60 = vmul.f32 %v1382_v40, %v2697_v39  ;;  %v1396_v27 = vmul.f32 %v1395_v49, %v2688_v30 }
 0x1dd   : > { %v893_v56 = vpop.permute.xlu1 %892  ;;  %v904_v57 = vpop.permute.xlu0 %903 }
 0x1de   : > { %v897_v61 = vadd.f32 %v893_v56, %v884_v47  ;;  %v909_v63 = vadd.f32 %v904_v57, %v896_v54 }
 0x1df   : > { %1304 = vrot.lane.b32.xlu1 %v1299_v38, %s1987_s6  ;;  %1315 = vrot.lane.b32.xlu0 %v1311_v1, %s1988_s24  ;;  %v1397_v38 = vmul.f32 %v1395_v49, %v2697_v39  ;;  %v1409_v1 = vmul.f32 %v1408_v55, %v2688_v30 }
 0x1e1   : > { %v906_v3 = vpop.permute.xlu1 %905  ;;  %v917_v4 = vpop.permute.xlu0 %916 }
 0x1e2   : > { %v910_v7 = vadd.f32 %v906_v3, %v897_v61  ;;  %v922_v8 = vadd.f32 %v917_v4, %v909_v63  ;;  %v1421_v63 = vstv %s2707_s5  ;;  %s173_s5 = scalar_lea.vmem [#allocation8], %s1679_s3  ;;  %s1572_s3 = scalar_lea.sflag [#allocation5], %s2142_s28 }
 0x1e3   : > { %1317 = vrot.lane.b32.xlu1 %v1312_v18, %s1988_s24  ;;  %1328 = vrot.lane.b32.xlu0 %v1324_v42, %s1989_s8  ;;  %v1410_v42 = vmul.f32 %v1408_v55, %v2697_v39  ;;  %s1585_s7 = sshll.u32 %s173_s5, 4  ;;  %s2818_s7 = int_to_ptr.vmem [resolvable:$true] %s1585_s7 }
 0x1e5   : > { %v919_v11 = vpop.permute.xlu1 %918  ;;  %v930_v62 = vpop.permute.xlu0 %929 }
 0x1e6   : > { %v923_v15 = vadd.f32 %v919_v11, %v910_v7  ;;  %v935_v17 = vadd.f32 %v930_v62, %v922_v8  ;;  %v1422_v7 = vmul.f32 %v1421_v63, %v2688_v30  ;;  %v1025_v8 = vmul.f32 %v1024_v0, %v2484_v59 }
 0x1e7   : > { %1330 = vrot.lane.b32.xlu1 %v1325_v13, %s1989_s8  ;;  %1341 = vrot.lane.b32.xlu0 %v1337_v14, %s1990_s16 }
 0x1e8   : > { %v942_v21 = vadd.f32 %v940_v16, %v935_v17  ;;  %v1435_v16 = vmul.f32 %v1434_v10, %v2688_v30  ;;  %v1026_v17 = vmul.f32 %v1024_v0, %v2493_v5  ;;  %v1467_v5 = vstv %s2732_s17  ;;  %s1992_s17 = smov [#allocation8]  }
 0x1e9   : > { %v932_v2 = vpop.permute.xlu1 %931  ;;  %v950_v24 = vpop.permute.xlu0 %949 }
 0x1ea   : > { %v936_v29 = vadd.f32 %v932_v2, %v923_v15  ;;  %v955_v6 = vadd.f32 %v950_v24, %v942_v21  ;;  %v1423_v15 = vmul.f32 %v1421_v63, %v2697_v39  ;;  %v1454_v21 = vstv %s2723_s14 }
 0x1eb   : > { %1343 = vrot.lane.b32.xlu1 %v1338_v25, %s1990_s16  ;;  %1354 = vrot.lane.b32.xlu0 %v1350_v26, %s1991_s25  ;;  %v1436_v26 = vmul.f32 %v1434_v10, %v2697_v39 }
 0x1ec   : > { %v943_v32 = vadd.f32 %v941_v28, %v936_v29  ;;  %v1455_v28 = vmul.f32 %v1454_v21, %v2739_v19  ;;  %v2748_v29 = vld [vmem:[#allocation2 + $0x26] sm:$0xff] }
 0x1ed   : > { %v952_v33 = vpop.permute.xlu1 %951  ;;  %v963_v34 = vpop.permute.xlu0 %962 }
 0x1ee   : > { %v956_v35 = vadd.f32 %v952_v33, %v943_v32  ;;  %v968_v36 = vadd.f32 %v963_v34, %v955_v6  ;;  %v1456_v32 = vmul.f32 %v1454_v21, %v2748_v29  ;;  %v1468_v33 = vmul.f32 %v1467_v5, %v2739_v19 }
 0x1ef   : > { %1356 = vrot.lane.b32.xlu1 %v1351_v12, %s1991_s25  ;;  %1374 = vrot.lane.b32.xlu0 %v1370_v22, %s1986_s4  ;;  %v1480_v34 = vstv %s2742_s20  ;;  %s1912_s20 = sshll.u32 %s1992_s17, 4  ;;  %s1913_s20 = int_to_ptr.vmem [resolvable:$false] %s1912_s20 }
 0x1f0   : > { %v1481_v40 = vmul.f32 %v1480_v34, %v2739_v19  ;;  %v1482_v49 = vmul.f32 %v1480_v34, %v2748_v29  ;;  %p1915_p6 = scmp.lt.s32.totalorder %s2818_s7, %s1913_s20 }
 0x1f1   : > { %v965_v41 = vpop.permute.xlu1 %964  ;;  %v976_v44 = vpop.permute.xlu0 %975 }
 0x1f2   : > { %v969_v43 = vadd.f32 %v965_v41, %v956_v35  ;;  %v981_v46 = vadd.f32 %v976_v44, %v968_v36  ;;  %v1469_v36 = vmul.f32 %v1467_v5, %v2748_v29  ;;  %v1493_v44 = vstv %s2751_s23  ;;  %s1914_s23 = scalar_lea.vmem %s1913_s20, 2048 }
 0x1f3   : > { %1376 = vrot.lane.b32.xlu1 %v1371_v20, %s1986_s4  ;;  %1387 = vrot.lane.b32.xlu0 %v1383_v23, %s1987_s6 }
 0x1f5   : > { %v978_v50 = vpop.permute.xlu1 %977  ;;  %v989_v51 = vpop.permute.xlu0 %988 }
 0x1f6   : > { %v982_v47 = vadd.f32 %v978_v50, %v969_v43  ;;  %v994_v54 = vadd.f32 %v989_v51, %v981_v46  ;;  %v1494_v50 = vmul.f32 %v1493_v44, %v2739_v19 }
 0x1f7   : > { %1389 = vrot.lane.b32.xlu1 %v1384_v60, %s1987_s6  ;;  %1400 = vrot.lane.b32.xlu0 %v1396_v27, %s1988_s24  ;;  %v1506_v27 = vstv %s2758_s19 }
 0x1f9   : > { %v991_v56 = vpop.permute.xlu1 %990  ;;  %v1002_v57 = vpop.permute.xlu0 %1001 }
 0x1fa   : > { %v995_v61 = vadd.f32 %v991_v56, %v982_v47  ;;  %v1007_v3 = vadd.f32 %v1002_v57, %v994_v54  ;;  %v1109_v47 = vstv %s2762_s29 }
 0x1fb   : > { %1402 = vrot.lane.b32.xlu1 %v1397_v38, %s1988_s24  ;;  %1413 = vrot.lane.b32.xlu0 %v1409_v1, %s1989_s8  ;;  %v1495_v38 = vmul.f32 %v1493_v44, %v2748_v29  ;;  %v1507_v1 = vmul.f32 %v1506_v27, %v2739_v19  ;;  %v1110_v63 = vmul.f32 %v1109_v47, %v2535_v53 }
 0x1fc   : > { %v1111_v10 = vmul.f32 %v1109_v47, %v2544_v58 }
 0x1fd   : > { %v1004_v4 = vpop.permute.xlu1 %1003  ;;  %v1015_v18 = vpop.permute.xlu0 %1014 }
 0x1fe   : > { %v1020_v9 = vadd.f32 %v1015_v18, %v1007_v3  ;;  %v1008_v11 = vadd.f32 %v1004_v4, %v995_v61  ;;  %v1519_v3 = vstv %s2767_s30 }
 0x1ff   : > { %1415 = vrot.lane.b32.xlu1 %v1410_v42, %s1989_s8  ;;  %1426 = vrot.lane.b32.xlu0 %v1422_v7, %s1990_s16 }
 0x200   : > { %v1027_v62 = vadd.f32 %v1025_v8, %v1020_v9  ;;  %v1508_v8 = vmul.f32 %v1506_v27, %v2748_v29  ;;  %v1520_v9 = vmul.f32 %v1519_v3, %v2739_v19 }
 0x201   : > { %v1017_v13 = vpop.permute.xlu1 %1016  ;;  %v1035_v14 = vpop.permute.xlu0 %1034 }
 0x202   : > { %v1021_v59 = vadd.f32 %v1017_v13, %v1008_v11  ;;  %v1040_v12 = vadd.f32 %v1035_v14, %v1027_v62  ;;  %v1521_v14 = vmul.f32 %v1519_v3, %v2748_v29 }
 0x203   : > { %1428 = vrot.lane.b32.xlu1 %v1423_v15, %s1990_s16  ;;  %1439 = vrot.lane.b32.xlu0 %v1435_v16, %s1991_s25 }
 0x204   : > { %v1028_v2 = vadd.f32 %v1026_v17, %v1021_v59 }
 0x205   : > { %v1037_v24 = vpop.permute.xlu1 %1036  ;;  %v1048_v25 = vpop.permute.xlu0 %1047 }
 0x206   : > { %v1053_v41 = vadd.f32 %v1048_v25, %v1040_v12  ;;  %v1041_v20 = vadd.f32 %v1037_v24, %v1028_v2 }
 0x207   : > { %1441 = vrot.lane.b32.xlu1 %v1436_v26, %s1991_s25  ;;  %1459 = vrot.lane.b32.xlu0 %v1455_v28, %s1986_s4 }
 0x209   : > { %v1050_v6 = vpop.permute.xlu1 %1049  ;;  %v1061_v31 = vpop.permute.xlu0 %1060 }
 0x20a   : > { %v1066_v23 = vadd.f32 %v1061_v31, %v1053_v41  ;;  %v1054_v51 = vadd.f32 %v1050_v6, %v1041_v20 }
 0x20b   : > { %1461 = vrot.lane.b32.xlu1 %v1456_v32, %s1986_s4  ;;  %1472 = vrot.lane.b32.xlu0 %v1468_v33, %s1987_s6  ;;  %s1750_s4 = sld [smem:[#allocation3 + $0x46]] }
 0x20d   : > { %v1063_v22 = vpop.permute.xlu1 %1062  ;;  %v1074_v35 = vpop.permute.xlu0 %1073 }
 0x20e   : > { %v1079_v60 = vadd.f32 %v1074_v35, %v1066_v23  ;;  %v1067_v54 = vadd.f32 %v1063_v22, %v1054_v51 }
 0x20f   : > { %1474 = vrot.lane.b32.xlu1 %v1469_v36, %s1987_s6  ;;  %1485 = vrot.lane.b32.xlu0 %v1481_v40, %s1988_s24  ;;  %s1757_s6 = sld [smem:[#allocation3 + $0x4d]] }
 0x211   : > { %v1076_v43 = vpop.permute.xlu1 %1075  ;;  %v1087_v46 = vpop.permute.xlu0 %1086  ;;  %v1194_v6 = vstv %s1750_s4 }
 0x212   : > { %v1092_v55 = vadd.f32 %v1087_v46, %v1079_v60  ;;  %v1080_v61 = vadd.f32 %v1076_v43, %v1067_v54  ;;  %v1195_v35 = vmul.f32 %v1194_v6, %v2586_v45  ;;  %v1196_v23 = vmul.f32 %v1194_v6, %v2595_v52 }
 0x213   : > { %1487 = vrot.lane.b32.xlu1 %v1482_v49, %s1988_s24  ;;  %1498 = vrot.lane.b32.xlu0 %v1494_v50, %s1989_s8  ;;  %s1764_s24 = sld [smem:[#allocation3 + $0x54]] }
 0x215   : > { %v1089_v56 = vpop.permute.xlu1 %1088  ;;  %v1100_v57 = vpop.permute.xlu0 %1099 }
 0x216   : > { %v1105_v0 = vadd.f32 %v1100_v57, %v1092_v55  ;;  %v1093_v4 = vadd.f32 %v1089_v56, %v1080_v61  ;;  %v1279_v61 = vstv %s1757_s6 }
 0x217   : > { %1500 = vrot.lane.b32.xlu1 %v1495_v38, %s1989_s8  ;;  %1511 = vrot.lane.b32.xlu0 %v1507_v1, %s1990_s16  ;;  %s1771_s8 = sld [smem:[#allocation3 + $0x5b]] }
 0x218   : > { %v1112_v18 = vadd.f32 %v1110_v63, %v1105_v0 }
 0x219   : > { %v1102_v42 = vpop.permute.xlu1 %1101  ;;  %v1120_v7 = vpop.permute.xlu0 %1119 }
 0x21a   : > { %v1106_v11 = vadd.f32 %v1102_v42, %v1093_v4  ;;  %v1125_v17 = vadd.f32 %v1120_v7, %v1112_v18  ;;  %v1280_v42 = vmul.f32 %v1279_v61, %v2637_v37 }
 0x21b   : > { %1513 = vrot.lane.b32.xlu1 %v1508_v8, %s1990_s16  ;;  %1524 = vrot.lane.b32.xlu0 %v1520_v9, %s1991_s25  ;;  %s1778_s16 = sld [smem:[#allocation3 + $0x62]] }
 0x21c   : > { %v1113_v53 = vadd.f32 %v1111_v10, %v1106_v11 }
 0x21d   : > { %v1122_v62 = vpop.permute.xlu1 %1121  ;;  %v1133_v13 = vpop.permute.xlu0 %1132 }
 0x21e   : > { %v1138_v2 = vadd.f32 %v1133_v13, %v1125_v17  ;;  %v1126_v58 = vadd.f32 %v1122_v62, %v1113_v53  ;;  %v1281_v53 = vmul.f32 %v1279_v61, %v2646_v48 }
 0x21f   : > { %1526 = vrot.lane.b32.xlu1 %v1521_v14, %s1991_s25  ;;  %s1787_s25 = sshll.u32 %s2031_s13, 10 }
 0x220   : > { %s2816_s13 = scalar_lea.hbm %s2868_s2, %s1787_s25 }
 0x221   : > { %v1135_v15 = vpop.permute.xlu1 %1134  ;;  %v1146_v16 = vpop.permute.xlu0 %1145 }
 0x222   : > { %v1151_v24 = vadd.f32 %v1146_v16, %v1138_v2  ;;  %v1139_v28 = vadd.f32 %v1135_v15, %v1126_v58 }
 0x225   : > { %v1148_v59 = vpop.permute.xlu1 %1147  ;;  %v1159_v21 = vpop.permute.xlu0 %1158 }
 0x226   : > { %v1164_v5 = vadd.f32 %v1159_v21, %v1151_v24  ;;  %v1152_v31 = vadd.f32 %v1148_v59, %v1139_v28 }
 0x229   : > { %v1161_v25 = vpop.permute.xlu1 %1160  ;;  %v1172_v26 = vpop.permute.xlu0 %1171 }
 0x22a   : > { %v1177_v32 = vadd.f32 %v1172_v26, %v1164_v5  ;;  %v1165_v12 = vadd.f32 %v1161_v25, %v1152_v31  ;;  %v1364_v5 = vstv %s1764_s24 }
 0x22d   : > { %v1174_v33 = vpop.permute.xlu1 %1173  ;;  %v1185_v34 = vpop.permute.xlu0 %1184 }
 0x22e   : > { %v1190_v22 = vadd.f32 %v1185_v34, %v1177_v32  ;;  %v1178_v36 = vadd.f32 %v1174_v33, %v1165_v12  ;;  %v1365_v12 = vmul.f32 %v1364_v5, %v2688_v30 }
 0x230   : > { %v1197_v40 = vadd.f32 %v1195_v35, %v1190_v22 }
 0x231   : > { %v1187_v41 = vpop.permute.xlu1 %1186  ;;  %v1205_v44 = vpop.permute.xlu0 %1204 }
 0x232   : > { %v1191_v20 = vadd.f32 %v1187_v41, %v1178_v36  ;;  %v1210_v60 = vadd.f32 %v1205_v44, %v1197_v40  ;;  %v1366_v44 = vmul.f32 %v1364_v5, %v2697_v39 }
 0x234   : > { %v1198_v43 = vadd.f32 %v1196_v23, %v1191_v20 }
 0x235   : > { %v1207_v46 = vpop.permute.xlu1 %1206  ;;  %v1218_v49 = vpop.permute.xlu0 %1217 }
 0x236   : > { %v1223_v54 = vadd.f32 %v1218_v49, %v1210_v60  ;;  %v1211_v55 = vadd.f32 %v1207_v46, %v1198_v43 }
 0x239   : > { %v1220_v50 = vpop.permute.xlu1 %1219  ;;  %v1231_v51 = vpop.permute.xlu0 %1230 }
 0x23a   : > { %v1236_v56 = vadd.f32 %v1231_v51, %v1223_v54  ;;  %v1224_v38 = vadd.f32 %v1220_v50, %v1211_v55 }
 0x23d   : > { %v1233_v27 = vpop.permute.xlu1 %1232  ;;  %v1244_v47 = vpop.permute.xlu0 %1243 }
 0x23e   : > { %v1249_v1 = vadd.f32 %v1244_v47, %v1236_v56  ;;  %v1237_v63 = vadd.f32 %v1233_v27, %v1224_v38 }
 0x241   : > { %v1246_v45 = vpop.permute.xlu1 %1245  ;;  %v1257_v57 = vpop.permute.xlu0 %1256 }
 0x242   : > { %v1262_v0 = vadd.f32 %v1257_v57, %v1249_v1  ;;  %v1250_v4 = vadd.f32 %v1246_v45, %v1237_v63  ;;  %v1449_v57 = vstv %s1771_s8 }
 0x245   : > { %v1259_v52 = vpop.permute.xlu1 %1258  ;;  %v1270_v3 = vpop.permute.xlu0 %1269 }
 0x246   : > { %v1275_v18 = vadd.f32 %v1270_v3, %v1262_v0  ;;  %v1263_v7 = vadd.f32 %v1259_v52, %v1250_v4  ;;  %v1450_v52 = vmul.f32 %v1449_v57, %v2739_v19 }
 0x248   : > { %v1282_v8 = vadd.f32 %v1280_v42, %v1275_v18 }
 0x249   : > { %v1272_v9 = vpop.permute.xlu1 %1271  ;;  %v1290_v10 = vpop.permute.xlu0 %1289 }
 0x24a   : > { %v1276_v11 = vadd.f32 %v1272_v9, %v1263_v7  ;;  %v1295_v17 = vadd.f32 %v1290_v10, %v1282_v8  ;;  %v1451_v8 = vmul.f32 %v1449_v57, %v2748_v29  ;;  %v1532_v29 = vstv %s1778_s16 }
 0x24c   : > { %v1283_v62 = vadd.f32 %v1281_v53, %v1276_v11 }
 0x24d   : > { %v1292_v13 = vpop.permute.xlu1 %1291  ;;  %v1303_v14 = vpop.permute.xlu0 %1302 }
 0x24e   : > { %v1308_v2 = vadd.f32 %v1303_v14, %v1295_v17  ;;  %v1296_v58 = vadd.f32 %v1292_v13, %v1283_v62 }
 0x251   : > { %v1305_v15 = vpop.permute.xlu1 %1304  ;;  %v1316_v16 = vpop.permute.xlu0 %1315 }
 0x252   : > { %v1321_v24 = vadd.f32 %v1316_v16, %v1308_v2  ;;  %v1309_v26 = vadd.f32 %v1305_v15, %v1296_v58 }
 0x255   : > { %v1318_v59 = vpop.permute.xlu1 %1317  ;;  %v1329_v21 = vpop.permute.xlu0 %1328 }
 0x256   : > { %v1334_v28 = vadd.f32 %v1329_v21, %v1321_v24  ;;  %v1322_v6 = vadd.f32 %v1318_v59, %v1309_v26 }
 0x259   : > { %v1331_v37 = vpop.permute.xlu1 %1330  ;;  %v1342_v25 = vpop.permute.xlu0 %1341 }
 0x25a   : > { %v1347_v31 = vadd.f32 %v1342_v25, %v1334_v28  ;;  %v1335_v33 = vadd.f32 %v1331_v37, %v1322_v6 }
 0x25d   : > { %v1344_v48 = vpop.permute.xlu1 %1343  ;;  %v1355_v32 = vpop.permute.xlu0 %1354 }
 0x25e   : > { %v1360_v34 = vadd.f32 %v1355_v32, %v1347_v31  ;;  %v1348_v22 = vadd.f32 %v1344_v48, %v1335_v33 }
 0x260   : > { %v1367_v35 = vadd.f32 %v1365_v12, %v1360_v34 }
 0x261   : > { %v1357_v36 = vpop.permute.xlu1 %1356  ;;  %v1375_v40 = vpop.permute.xlu0 %1374 }
 0x262   : > { %v1361_v41 = vadd.f32 %v1357_v36, %v1348_v22  ;;  %v1380_v50 = vadd.f32 %v1375_v40, %v1367_v35 }
 0x264   : > { %v1368_v20 = vadd.f32 %v1366_v44, %v1361_v41  ;;  %v1547_v41 = vld [vmem:[%s2148_s26] sm:$0xff]  ;;  %v1549_v44 = vld [vmem:[%s2148_s26 + $0x10] sm:$0xff] }
 0x265   : > { %v1377_v23 = vpop.permute.xlu1 %1376  ;;  %v1388_v43 = vpop.permute.xlu0 %1387 }
 0x266   : > { %v1393_v27 = vadd.f32 %v1388_v43, %v1380_v50  ;;  %v1381_v47 = vadd.f32 %v1377_v23, %v1368_v20  ;;  %v1551_v20 = vld [vmem:[%s2148_s26 + $0x20] sm:$0xff]  ;;  %v1553_v23 = vld [vmem:[%s2148_s26 + $0x30] sm:$0xff] }
 0x269   : > { %v1390_v46 = vpop.permute.xlu1 %1389  ;;  %v1401_v49 = vpop.permute.xlu0 %1400 }
 0x26a   : > { %v1406_v54 = vadd.f32 %v1401_v49, %v1393_v27  ;;  %v1394_v56 = vadd.f32 %v1390_v46, %v1381_v47  ;;  %v1548_v46 = vld [vmem:[%s2148_s26 + $0x8] sm:$0xff]  ;;  %v1550_v27 = vld [vmem:[%s2148_s26 + $0x18] sm:$0xff] }
 0x26b   : > { %v1552_v47 = vld [vmem:[%s2148_s26 + $0x28] sm:$0xff] }
 0x26d   : > { %v1403_v51 = vpop.permute.xlu1 %1402  ;;  %v1414_v60 = vpop.permute.xlu0 %1413 }
 0x26e   : > { %v1419_v45 = vadd.f32 %v1414_v60, %v1406_v54  ;;  %v1407_v38 = vadd.f32 %v1403_v51, %v1394_v56  ;;  %v1554_v54 = vld [vmem:[%s2148_s26 + $0x38] sm:$0xff]  ;;  %s1908_s26 = scalar_lea.vmem %s2818_s7, 1024 }
 0x26f   : > { %p1909_p12 = scmp.ne.s32.totalorder %s2818_s7, %s1908_s26  ;;  %p1916_p4 = scmp.lt.s32.totalorder %s1914_s23, %s1908_s26 }
 0x271   : > { %v1416_v30 = vpop.permute.xlu1 %1415  ;;  %v1427_v55 = vpop.permute.xlu0 %1426  ;;  %p1910_p7 = pnand %p1909_p12, %p2882_p13  ;;  %p1917_p5 = por %p1916_p4, %p1915_p6 }
 0x272   : > { %v1432_v1 = vadd.f32 %v1427_v55, %v1419_v45  ;;  %v1420_v63 = vadd.f32 %v1416_v30, %v1407_v38 }
 0x273   : > { %p1911_p3 = pneg %p1910_p7 }
 0x275   : > { %v1429_v39 = vpop.permute.xlu1 %1428  ;;  %v1440_v61 = vpop.permute.xlu0 %1439  ;;  %p1918_p0 = pnand %p1917_p5, %p1911_p3 }
 0x276   : > { %v1445_v0 = vadd.f32 %v1440_v61, %v1432_v1  ;;  %v1433_v3 = vadd.f32 %v1429_v39, %v1420_v63 }
 0x278   : > { %v1452_v4 = vadd.f32 %v1450_v52, %v1445_v0 }
 0x279   : > { %v1442_v18 = vpop.permute.xlu1 %1441  ;;  %v1460_v42 = vpop.permute.xlu0 %1459 }
 0x27a   : > { %v1446_v7 = vadd.f32 %v1442_v18, %v1433_v3  ;;  %v1465_v13 = vadd.f32 %v1460_v42, %v1452_v4 }
 0x27c   : > { %v1453_v9 = vadd.f32 %v1451_v8, %v1446_v7 }
 0x27d   : > { %v1462_v10 = vpop.permute.xlu1 %1461  ;;  %v1473_v11 = vpop.permute.xlu0 %1472 }
 0x27e   : > { %v1478_v16 = vadd.f32 %v1473_v11, %v1465_v13  ;;  %v1466_v17 = vadd.f32 %v1462_v10, %v1453_v9 }
 0x281   : > { %v1475_v53 = vpop.permute.xlu1 %1474  ;;  %v1486_v62 = vpop.permute.xlu0 %1485 }
 0x282   : > { %v1491_v59 = vadd.f32 %v1486_v62, %v1478_v16  ;;  %v1479_v2 = vadd.f32 %v1475_v53, %v1466_v17 }
 0x285   : > { %v1488_v14 = vpop.permute.xlu1 %1487  ;;  %v1499_v15 = vpop.permute.xlu0 %1498 }
 0x286   : > { %v1504_v58 = vadd.f32 %v1499_v15, %v1491_v59  ;;  %v1492_v24 = vadd.f32 %v1488_v14, %v1479_v2 }
 0x289   : > { %v1501_v19 = vpop.permute.xlu1 %1500  ;;  %v1512_v21 = vpop.permute.xlu0 %1511 }
 0x28a   : > { %v1517_v37 = vadd.f32 %v1512_v21, %v1504_v58  ;;  %v1505_v28 = vadd.f32 %v1501_v19, %v1492_v24 }
 0x28d   : > { %v1514_v25 = vpop.permute.xlu1 %1513  ;;  %v1525_v26 = vpop.permute.xlu0 %1524 }
 0x28e   : > { %v1530_v5 = vadd.f32 %v1525_v26, %v1517_v37  ;;  %v1518_v6 = vadd.f32 %v1514_v25, %v1505_v28 }
 0x290   : > { %v1533_v31 = vadd.f32 %v1532_v29, %v1530_v5 }
 0x291   : > { %v1527_v48 = vpop.permute.xlu1 %1526 }
 0x292   : > { %v1779_v32 = vmul.f32 -1.442695, %v1533_v31  ;;  %v1531_v33 = vadd.f32 %v1527_v48, %v1518_v6 }
 0x294   : > { %1857 = vpow2.f32 %v1779_v32  ;;  %v1534_v34 = vadd.f32 %v1532_v29, %v1531_v33 }
 0x296   : > { %v1780_v12 = vmul.f32 -1.442695, %v1534_v34 }
 0x298   : > { %1859 = vpow2.f32 %v1780_v12 }
 0x29e   : > { %v1858_v22 = vpop.eup %1857 }
 0x29f   : > { %v1541_v35 = vadd.f32 1.0, %v1858_v22 }
 0x2a1   : > { %1861 = vrcp.f32 %v1541_v35 }
 0x2a2   : > { %v1860_v36 = vpop.eup %1859 }
 0x2a3   : > { %v1542_v40 = vadd.f32 1.0, %v1860_v36 }
 0x2a5   : > { %1863 = vrcp.f32 %v1542_v40 }
 0x2ab   : > { %v1862_v43 = vpop.eup %1861 }
 0x2ac   : > { %v1555_v49 = vmul.f32 %v1862_v43, %v1547_v41  ;;  %v1557_v50 = vmul.f32 %v1862_v43, %v1549_v44  ;;  %v1559_v51 = vmul.f32 %v1862_v43, %v1551_v20  ;;  %v1561_v60 = vmul.f32 %v1862_v43, %v1553_v23 }
 0x2ae   : > { %1563 = vst.msk [vmem:[%s173_s5] sm:$0xff] %vm182_vm0, %v1555_v49  ;;  %1565 = vst.msk [vmem:[%s173_s5 + $0x10] sm:$0xff] %vm182_vm0, %v1557_v50 }
 0x2af   : > { %1567 = vst.msk [vmem:[%s173_s5 + $0x20] sm:$0xff] %vm182_vm0, %v1559_v51  ;;  %1569 = vst.msk [vmem:[%s173_s5 + $0x30] sm:$0xff] %vm182_vm0, %v1561_v60  ;;  %v1864_v30 = vpop.eup %1863 }
 0x2b0   : > { %v1556_v55 = vmul.f32 %v1864_v30, %v1548_v46  ;;  %v1558_v56 = vmul.f32 %v1864_v30, %v1550_v27  ;;  %v1560_v45 = vmul.f32 %v1864_v30, %v1552_v47  ;;  %v1562_v57 = vmul.f32 %v1864_v30, %v1554_v54 }
 0x2b2   : > { %1564 = vst.msk [vmem:[%s173_s5 + $0x8] sm:$0xff] %vm182_vm0, %v1556_v55  ;;  %1566 = vst.msk [vmem:[%s173_s5 + $0x18] sm:$0xff] %vm182_vm0, %v1558_v56 }
 0x2b3   : > { %1568 = vst.msk [vmem:[%s173_s5 + $0x28] sm:$0xff] %vm182_vm0, %v1560_v45  ;;  %1570 = vst.msk [vmem:[%s173_s5 + $0x38] sm:$0xff] %vm182_vm0, %v1562_v57 }
 0x2b4   : > { %1921 = shalt.err (!%p1918_p0)
}
 0x2b5   : > { %s1922_s19 = scalar_lea.hbm %s2816_s13, 1024  ;;  %s1926_s4 = scalar_lea.hbm %s2868_s2, 2048 }
 0x2b6   : > { %p1923_p8 = scmp.ne.s32.totalorder %s2816_s13, %s1922_s19  ;;  %p1927_p1 = scmp.lt.u32.totalorder %s2816_s13, %s2868_s2 }
 0x2b7   : > { %p1928_p2 = scmp.lt.u32.totalorder %s1926_s4, %s1922_s19  ;;  %p1930_p12 = scmp.lt.u32.totalorder %s1922_s19, %s2816_s13 }
 0x2b8   : > { %p1924_p9 = pnand %p1923_p8, %p2882_p13 }
 0x2b9   : > { %p1929_p11 = por %p1928_p2, %p1927_p1 }
 0x2ba   : > { %p1925_p10 = pneg %p1924_p9 }
 0x2bb   : > { %p1931_p7 = por %p1930_p12, %p1929_p11 }
 0x2bd   : > { %p1932_p3 = pnand %p1931_p7, %p1925_p10 }
 0x2bf   : > { %1935 = shalt.err (!%p1932_p3)
}
 0x2c0   : > { %s1993_s8 = smov 128   ;;  %s1994_s16 = smov 8  }
 0x2c1   : > { %1794 = dma.vmem_to_hbm [thread:$0]  (%p2882_p13), %s2818_s7, 1024, %s2816_s13, %s1572_s3, %s1993_s8, %s1993_s8, %s1994_s16  }
 0x2c2 PF: > { %s1600_s25 = sand.u32 1, %s1966_s9   ;;  %p2883_p6 = scmp.ne.s32.totalorder %s2875_s22, 0 }
 0x2c3   : > { %p2884_p4 = scmp.ge.s32.totalorder %s1978_s12, 2  ;;  %s1601_s5 = scalar_lea.sflag [#allocation5], %s1600_s25 }
 0x2c5   : > { %p1805_p5 = pnand %p2884_p4, %p2883_p6 }
 0x2c7   : > { %1961 = dma.done.wait (!%p1805_p5), %s1601_s5, 1024  }
 0x2c8   : > { %1963 = vsyncadd (!%p1805_p5), %s1601_s5, 4294966272  ;;  %p16_p0 = scmp.ge.s32.totalorder %s2035_s15, 4   ;;  %s2885_s9 = smov %s1970_s10 }
 0x2c9   : > { %s2886_s10 = smov %s1974_s11  ;;  %s2887_s11 = smov %s2047_s18 }
 0x2ca   : > { %s2888_s12 = smov %s2035_s15  ;;  %18 = sbr.rel (!%p16_p0) target bundleno = 6 (0x6), region = 79 }
 0x2d1   :  { %1606 = vsyncpa [#allocation4], 1 }
 0x2d2   :  { %1608 = vsyncpa [#allocation4 + $0x1], 1 }
 0x2d3   :  { %1609 = vsyncpa [#allocation5], 1 }
 0x2d4   :  { %1611 = vsyncpa [#allocation5 + $0x1], 1 }
 0x2d5   :  { %1612 = vsyncpa [#allocation6], 1 }
 0x2d6   :  { %1614 = vsyncpa [#allocation6 + $0x1], 1 }

</bundles_post_ra>
